<compile_context>
chip_gen: v7x
topology: tpu7x:2x2x1
jax: 0.10.0
libtpu: 0.0.40
codegen_flags: <defaults>
</compile_context>

<pallas_src>
import functools

import jax
import jax.numpy as jnp
from jax.experimental import pallas as pl
from jax.experimental.pallas import tpu as pltpu


MXU_DTYPE = jnp.bfloat16          # matmul operands; accumulation stays f32


def _gate_group(fwd4h, bwd4h, hidden):
    """Interleave per-gate H-wide blocks of two 4H operands along the last
    axis -> [i_f, i_b, f_f, f_b, g_f, g_b, o_f, o_b]."""
    parts = []
    for g in range(4):
        parts.append(fwd4h[..., g * hidden:(g + 1) * hidden])
        parts.append(bwd4h[..., g * hidden:(g + 1) * hidden])
    return jnp.concatenate(parts, axis=-1)


def _pick_time_chunk(T, B, target=32):
    """Largest chunk <= target that divides T and keeps (chunk*B) sublane
    aligned; falls back to the whole sequence (always layout-legal)."""
    for tc in range(min(T, target), 0, -1):
        if T % tc == 0 and (tc * B) % 8 == 0:
            return tc
    return T


# ---------------------------------------------------------------------------
# Recurrent sweep: grid over time-chunks; h/c carried in VMEM scratch.
# ---------------------------------------------------------------------------
def _bilstm_chunk_kernel(x_ref, w_in_ref, b_ref, whh_ref,      # inputs
                         rec_f_ref, rec_b_ref,                 # outputs
                         g_ref, h_ref, c_ref,                  # scratch
                         *, hidden, chunk, batch):
    H, TC, B = hidden, chunk, batch

    # -- init carried state on the very first time-chunk ---------------------
    @pl.when(pl.program_id(0) == 0)
    def _():
        h_ref[...] = jnp.zeros_like(h_ref)
        c_ref[...] = jnp.zeros_like(c_ref)

    # -- per-chunk input projection (both directions, one MXU matmul), staged
    #    in VMEM scratch; off the serial recurrence path ----------------------
    g_ref[...] = (jnp.dot(x_ref[...], w_in_ref[...],
                          preferred_element_type=jnp.float32)
                  + b_ref[...])                                # (TC*B, 8H) f32

    whh = whh_ref[...]                                         # (2H, 8H) bf16

    def step(t, carry):
        h, c = carry                                           # (B, 2H) f32, [fwd|bwd]
        pre = g_ref[pl.ds(t * B, B), :] + jnp.dot(
            h.astype(whh.dtype), whh,
            preferred_element_type=jnp.float32)                # (B, 8H)
        # gate-grouped columns: contiguous (B, 2H) slices, PyTorch order i,f,g,o
        i_g = jax.nn.sigmoid(pre[:, 0 * H:2 * H])
        f_g = jax.nn.sigmoid(pre[:, 2 * H:4 * H])
        g_g = jnp.tanh(pre[:, 4 * H:6 * H])
        o_g = jax.nn.sigmoid(pre[:, 6 * H:8 * H])
        c = f_g * c + i_g * g_g
        h = o_g * jnp.tanh(c)
        out = h.astype(rec_f_ref.dtype)
        rec_f_ref[pl.ds(t * B, B), :] = out[:, :H]             # fwd @ local t
        rec_b_ref[pl.ds((TC - 1 - t) * B, B), :] = out[:, H:]  # bwd, reversed slot
        return h, c

    unroll = min(TC, 8 if H < 128 else 4)
    h_fin, c_fin = jax.lax.fori_loop(0, TC, step,
                                     (h_ref[...], c_ref[...]), unroll=unroll)

    # carry the state into the next time-chunk
    h_ref[...] = h_fin
    c_ref[...] = c_fin


# ---------------------------------------------------------------------------
# Embedding Linear, concat-free:  out = rec_f @ Wf + rec_b @ Wb + bias
# ---------------------------------------------------------------------------
def _dual_linear_kernel(a_ref, b_ref, wa_ref, wb_ref, bias_ref, o_ref):
    acc = jnp.dot(a_ref[...], wa_ref[...], preferred_element_type=jnp.float32)
    acc = acc + jnp.dot(b_ref[...], wb_ref[...],
                        preferred_element_type=jnp.float32)
    o_ref[...] = (acc + bias_ref[...]).astype(o_ref.dtype)


def _dual_linear(a2d, b2d, wa_t, wb_t, bias_row, *, tile_m=512):
    M, Ka = a2d.shape
    Kb = b2d.shape[1]
    N = wa_t.shape[1]
    tm = M if M <= tile_m else tile_m
    return pl.pallas_call(
        _dual_linear_kernel,
        out_shape=jax.ShapeDtypeStruct((M, N), jnp.float32),
        grid_spec=pltpu.PrefetchScalarGridSpec(
            num_scalar_prefetch=0,
            grid=(pl.cdiv(M, tm),),
            in_specs=[
                pl.BlockSpec((tm, Ka), lambda i: (i, 0)),
                pl.BlockSpec((tm, Kb), lambda i: (i, 0)),
                pl.BlockSpec((Ka, N), lambda i: (0, 0)),   # resident weight
                pl.BlockSpec((Kb, N), lambda i: (0, 0)),   # resident weight
                pl.BlockSpec((1, N), lambda i: (0, 0)),    # resident bias
            ],
            out_specs=pl.BlockSpec((tm, N), lambda i: (i, 0)),
        ),
        compiler_params=pltpu.CompilerParams(
            dimension_semantics=("parallel",)),
    )(a2d, b2d, wa_t, wb_t, bias_row)


# ---------------------------------------------------------------------------
# Wrapper (forward pass of BidirectionalLSTM)
# ---------------------------------------------------------------------------
def bidirectional_lstm_forward(x, params, *, time_chunk=32):
    """x: (T, B, nIn) -> (T, B, nOut); same semantics as the PyTorch module."""
    T, B, nIn = x.shape
    H = params["whh_f"].shape[1]
    nOut = params["w_emb"].shape[0]

    tc = _pick_time_chunk(T, B, time_chunk)
    nT = T // tc

    # ---- one-time layout plumbing (wrapper only, never per-step) ----------
    zin = jnp.zeros((nIn, 4 * H), jnp.float32)
    zh = jnp.zeros((H, 4 * H), jnp.float32)
    # block-diagonal, gate-grouped input weight: rows [:nIn] = fwd, [nIn:] = bwd
    w_in = jnp.concatenate(
        [_gate_group(params["wih_f"].T, zin, H),
         _gate_group(zin, params["wih_b"].T, H)],
        axis=0).astype(MXU_DTYPE)                              # (2*nIn, 8H)
    # block-diagonal, gate-grouped recurrent weight: rows [:H] = fwd, [H:] = bwd
    whh = jnp.concatenate(
        [_gate_group(params["whh_f"].T, zh, H),
         _gate_group(zh, params["whh_b"].T, H)],
        axis=0).astype(MXU_DTYPE)                              # (2H, 8H)
    bias = _gate_group(
        (params["bih_f"] + params["bhh_f"]).reshape(1, 4 * H),
        (params["bih_b"] + params["bhh_b"]).reshape(1, 4 * H),
        H).astype(jnp.float32)                                 # (1, 8H)
    # forward x and time-reversed x packed along lanes -> (T*B, 2*nIn)
    x_cat = jnp.concatenate([x, x[::-1]], axis=-1).astype(MXU_DTYPE)
    x_cat = x_cat.reshape(T * B, 2 * nIn)

    kernel = functools.partial(_bilstm_chunk_kernel,
                               hidden=H, chunk=tc, batch=B)

    flops = 2 * T * B * (2 * nIn) * (8 * H) + 2 * T * B * (2 * H) * (8 * H)
    bytes_accessed = int(x_cat.size * 2 + 2 * T * B * H * 2
                         + (w_in.size + whh.size) * 2 + bias.size * 4)
    cost = pl.CostEstimate(flops=flops,
                           transcendentals=5 * T * B * 2 * H,
                           bytes_accessed=bytes_accessed)

    rec_f, rec_b = pl.pallas_call(
        kernel,
        out_shape=(jax.ShapeDtypeStruct((T * B, H), MXU_DTYPE),
                   jax.ShapeDtypeStruct((T * B, H), MXU_DTYPE)),
        grid_spec=pltpu.PrefetchScalarGridSpec(
            num_scalar_prefetch=0,
            grid=(nT,),
            in_specs=[
                pl.BlockSpec((tc * B, 2 * nIn), lambda i: (i, 0)),   # x chunk
                pl.BlockSpec((2 * nIn, 8 * H), lambda i: (0, 0)),    # Wih packed
                pl.BlockSpec((1, 8 * H), lambda i: (0, 0)),          # bias packed
                pl.BlockSpec((2 * H, 8 * H), lambda i: (0, 0)),      # Whh packed
            ],
            out_specs=[
                pl.BlockSpec((tc * B, H), lambda i: (i, 0)),            # fwd hidden
                pl.BlockSpec((tc * B, H), lambda i: (nT - 1 - i, 0)),   # bwd hidden
            ],
            scratch_shapes=[
                pltpu.VMEM((tc * B, 8 * H), jnp.float32),  # per-chunk gate preacts
                pltpu.VMEM((B, 2 * H), jnp.float32),       # h carry  [fwd|bwd]
                pltpu.VMEM((B, 2 * H), jnp.float32),       # c carry  [fwd|bwd]
            ],
        ),
        compiler_params=pltpu.CompilerParams(
            dimension_semantics=("arbitrary",)),           # sequential time chunks
        cost_estimate=cost,
    )(x_cat, w_in, bias, whh)

    # ---- embedding Linear (fused concat): rec_f @ Wf + rec_b @ Wb + b ------
    w_emb = params["w_emb"]                                # (nOut, 2H)
    out = _dual_linear(rec_f, rec_b,
                       w_emb[:, :H].T.astype(MXU_DTYPE),
                       w_emb[:, H:].T.astype(MXU_DTYPE),
                       params["b_emb"].reshape(1, nOut).astype(jnp.float32))
    return out.reshape(T, B, nOut)


# ---------------------------------------------------------------------------
# Pure-JAX f32 reference (sanity check)
# ---------------------------------------------------------------------------
def _reference(x, params):
    T, B, nIn = x.shape
    H = params["whh_f"].shape[1]

    def direction(xs, wih, whh, bih, bhh):
        def step(carry, xt):
            h, c = carry
            g = xt @ wih.T + h @ whh.T + bih + bhh
            i, f, gg, o = jnp.split(g, 4, axis=-1)
            i, f, o = jax.nn.sigmoid(i), jax.nn.sigmoid(f), jax.nn.sigmoid(o)
            c = f * c + i * jnp.tanh(gg)
            h = o * jnp.tanh(c)
            return (h, c), h
        init = (jnp.zeros((B, H), x.dtype), jnp.zeros((B, H), x.dtype))
        _, hs = jax.lax.scan(step, init, xs)
        return hs

    hf = direction(x, params["wih_f"], params["whh_f"],
                   params["bih_f"], params["bhh_f"])
    hb = direction(x[::-1], params["wih_b"], params["whh_b"],
                   params["bih_b"], params["bhh_b"])[::-1]
    rec = jnp.concatenate([hf, hb], axis=-1)
    out = rec.reshape(T * B, 2 * H) @ params["w_emb"].T + params["b_emb"]
    return out.reshape(T, B, -1)


# ---------------------------------------------------------------------------
if __name__ == "__main__":
    # Shapes: T=8, B=2, nIn=16, nHidden=32, nOut=16
    T, B, nIn, H, nOut = 8, 2, 16, 32, 16
    key = jax.random.PRNGKey(0)
    ks = jax.random.split(key, 11)
    k_scale = 1.0 / jnp.sqrt(H)

    def u(k, shape):
        return jax.random.uniform(k, shape, jnp.float32, -k_scale, k_scale)

    params = {
        # forward direction LSTM params (PyTorch shapes)
        "wih_f": u(ks[0], (4 * H, nIn)),
        "whh_f": u(ks[1], (4 * H, H)),
        "bih_f": u(ks[2], (4 * H,)),
        "bhh_f": u(ks[3], (4 * H,)),
        # backward ("_reverse") direction LSTM params
        "wih_b": u(ks[4], (4 * H, nIn)),
        "whh_b": u(ks[5], (4 * H, H)),
        "bih_b": u(ks[6], (4 * H,)),
        "bhh_b": u(ks[7], (4 * H,)),
        # embedding Linear(nHidden*2, nOut)
        "w_emb": u(ks[8], (nOut, 2 * H)),
        "b_emb": u(ks[9], (nOut,)),
    }

    x = jax.random.normal(ks[10], (T, B, nIn), jnp.float32)

    fwd = jax.jit(bidirectional_lstm_forward)
    out = jax.block_until_ready(fwd(x, params))

    ref = _reference(x, params)
    assert out.shape == (T, B, nOut)
    # bf16 MXU operands (f32 accumulation, f32 gate math) vs pure-f32 reference.
    assert jnp.allclose(out, ref, rtol=2e-2, atol=2e-2), "mismatch vs reference"

    print("KERNEL_OK")
</pallas_src>

<mosaic_0001>
module attributes {stable_mosaic.version = 11 : i64} {
  func.func @_dual_linear_kernel(%arg0: i32, %arg1: memref<16x32xbf16, #tpu.memory_space<vmem>>, %arg2: memref<16x32xbf16, #tpu.memory_space<vmem>>, %arg3: memref<32x16xbf16, #tpu.memory_space<vmem>>, %arg4: memref<32x16xbf16, #tpu.memory_space<vmem>>, %arg5: memref<1x16xf32, #tpu.memory_space<vmem>>, %arg6: memref<16x16xf32, #tpu.memory_space<vmem>>) attributes {dimension_semantics = [#tpu.dimension_semantics<parallel>], iteration_bounds = array<i64: 1>, scalar_prefetch = 0 : i64, scratch_operands = 0 : i64, tpu.core_type = #tpu.core_type<tc>, window_params = [{transform_indices = @transform_0, window_bounds = array<i64: 16, 32>}, {transform_indices = @transform_1, window_bounds = array<i64: 16, 32>}, {pipeline_mode = #tpu.pipeline_mode<synchronous>, transform_indices = @transform_2, window_bounds = array<i64: 32, 16>}, {pipeline_mode = #tpu.pipeline_mode<synchronous>, transform_indices = @transform_3, window_bounds = array<i64: 32, 16>}, {pipeline_mode = #tpu.pipeline_mode<synchronous>, transform_indices = @transform_4, window_bounds = array<i64: 1, 16>}, {transform_indices = @transform_5, window_bounds = array<i64: 16, 16>}]} {
    %c0 = arith.constant 0 : index
    %c0_0 = arith.constant 0 : index
    %0 = vector.load %arg1[%c0, %c0_0] : memref<16x32xbf16, #tpu.memory_space<vmem>>, vector<16x32xbf16>
    %c0_1 = arith.constant 0 : index
    %c0_2 = arith.constant 0 : index
    %1 = vector.load %arg3[%c0_1, %c0_2] : memref<32x16xbf16, #tpu.memory_space<vmem>>, vector<32x16xbf16>
    %cst = arith.constant dense<0.000000e+00> : vector<16x16xf32>
    %2 = tpu.matmul %0, %1, %cst {dimension_numbers = #tpu.dot_dimension_numbers<[1], [0], [0], [1], [0, 0, 1, 1], [], []>} : vector<16x32xbf16>, vector<32x16xbf16>, vector<16x16xf32> -> vector<16x16xf32>
    %c0_3 = arith.constant 0 : index
    %c0_4 = arith.constant 0 : index
    %3 = vector.load %arg2[%c0_3, %c0_4] : memref<16x32xbf16, #tpu.memory_space<vmem>>, vector<16x32xbf16>
    %c0_5 = arith.constant 0 : index
    %c0_6 = arith.constant 0 : index
    %4 = vector.load %arg4[%c0_5, %c0_6] : memref<32x16xbf16, #tpu.memory_space<vmem>>, vector<32x16xbf16>
    %cst_7 = arith.constant dense<0.000000e+00> : vector<16x16xf32>
    %5 = tpu.matmul %3, %4, %cst_7 {dimension_numbers = #tpu.dot_dimension_numbers<[1], [0], [0], [1], [0, 0, 1, 1], [], []>} : vector<16x32xbf16>, vector<32x16xbf16>, vector<16x16xf32> -> vector<16x16xf32>
    %6 = arith.addf %2, %5 : vector<16x16xf32>
    %c0_8 = arith.constant 0 : index
    %c0_9 = arith.constant 0 : index
    %7 = vector.load %arg5[%c0_8, %c0_9] : memref<1x16xf32, #tpu.memory_space<vmem>>, vector<1x16xf32>
    %8 = vector.broadcast %7 : vector<1x16xf32> to vector<16x16xf32>
    %9 = arith.addf %6, %8 : vector<16x16xf32>
    %c0_10 = arith.constant 0 : index
    %c0_11 = arith.constant 0 : index
    %10 = vector.load %arg6[%c0_10, %c0_11] : memref<16x16xf32, #tpu.memory_space<vmem>>, vector<16x16xf32>
    tpu.vector_store %arg6[%c0_10, %c0_11], %9 {strides = array<i32>} : memref<16x16xf32, #tpu.memory_space<vmem>>, vector<16x16xf32>,
    return
  }
  func.func @transform_0(%arg0: i32) -> (i32, i32) {
    %c0_i32 = arith.constant 0 : i32
    %c0_i32_0 = arith.constant 0 : i32
    return %arg0, %c0_i32 : i32, i32
  }
  func.func @transform_1(%arg0: i32) -> (i32, i32) {
    %c0_i32 = arith.constant 0 : i32
    %c0_i32_0 = arith.constant 0 : i32
    return %arg0, %c0_i32 : i32, i32
  }
  func.func @transform_2(%arg0: i32) -> (i32, i32) {
    %c0_i32 = arith.constant 0 : i32
    %c0_i32_0 = arith.constant 0 : i32
    %c0_i32_1 = arith.constant 0 : i32
    return %c0_i32, %c0_i32_0 : i32, i32
  }
  func.func @transform_3(%arg0: i32) -> (i32, i32) {
    %c0_i32 = arith.constant 0 : i32
    %c0_i32_0 = arith.constant 0 : i32
    %c0_i32_1 = arith.constant 0 : i32
    return %c0_i32, %c0_i32_0 : i32, i32
  }
  func.func @transform_4(%arg0: i32) -> (i32, i32) {
    %c0_i32 = arith.constant 0 : i32
    %c0_i32_0 = arith.constant 0 : i32
    %c0_i32_1 = arith.constant 0 : i32
    return %c0_i32, %c0_i32_0 : i32, i32
  }
  func.func @transform_5(%arg0: i32) -> (i32, i32) {
    %c0_i32 = arith.constant 0 : i32
    %c0_i32_0 = arith.constant 0 : i32
    return %arg0, %c0_i32 : i32, i32
  }
}

module attributes {stable_mosaic.version = 11 : i64} {
  func.func @_bilstm_chunk_kernel(%arg0: i32, %arg1: memref<16x32xbf16, #tpu.memory_space<vmem>>, %arg2: memref<32x256xbf16, #tpu.memory_space<vmem>>, %arg3: memref<1x256xf32, #tpu.memory_space<vmem>>, %arg4: memref<64x256xbf16, #tpu.memory_space<vmem>>, %arg5: memref<16x32xbf16, #tpu.memory_space<vmem>>, %arg6: memref<16x32xbf16, #tpu.memory_space<vmem>>, %arg7: memref<16x256xf32, #tpu.memory_space<vmem>>, %arg8: memref<2x64xf32, #tpu.memory_space<vmem>>, %arg9: memref<2x64xf32, #tpu.memory_space<vmem>>) attributes {dimension_semantics = [#tpu.dimension_semantics<arbitrary>], iteration_bounds = array<i64: 1>, scalar_prefetch = 0 : i64, scratch_operands = 3 : i64, tpu.core_type = #tpu.core_type<tc>, window_params = [{transform_indices = @transform_0, window_bounds = array<i64: 16, 32>}, {pipeline_mode = #tpu.pipeline_mode<synchronous>, transform_indices = @transform_1, window_bounds = array<i64: 32, 256>}, {pipeline_mode = #tpu.pipeline_mode<synchronous>, transform_indices = @transform_2, window_bounds = array<i64: 1, 256>}, {pipeline_mode = #tpu.pipeline_mode<synchronous>, transform_indices = @transform_3, window_bounds = array<i64: 64, 256>}, {transform_indices = @transform_4, window_bounds = array<i64: 16, 32>}, {transform_indices = @transform_5, window_bounds = array<i64: 16, 32>}]} {
    %c0_i32 = arith.constant 0 : i32
    %0 = arith.cmpi eq, %arg0, %c0_i32 : i32
    %1 = arith.extui %0 : i1 to i32
    %c0_i32_0 = arith.constant 0 : i32
    %2 = arith.cmpi ne, %1, %c0_i32_0 : i32
    scf.if %2 {
      %cst_107 = arith.constant 0.000000e+00 : f32
      %343 = vector.broadcast %cst_107 : f32 to vector<2x64xf32>
      %c0_108 = arith.constant 0 : index
      %c0_109 = arith.constant 0 : index
      %344 = vector.load %arg8[%c0_108, %c0_109] : memref<2x64xf32, #tpu.memory_space<vmem>>, vector<2x64xf32>
      tpu.vector_store %arg8[%c0_108, %c0_109], %343 {strides = array<i32>} : memref<2x64xf32, #tpu.memory_space<vmem>>, vector<2x64xf32>,
      %cst_110 = arith.constant 0.000000e+00 : f32
      %345 = vector.broadcast %cst_110 : f32 to vector<2x64xf32>
      %c0_111 = arith.constant 0 : index
      %c0_112 = arith.constant 0 : index
      %346 = vector.load %arg9[%c0_111, %c0_112] : memref<2x64xf32, #tpu.memory_space<vmem>>, vector<2x64xf32>
      tpu.vector_store %arg9[%c0_111, %c0_112], %345 {strides = array<i32>} : memref<2x64xf32, #tpu.memory_space<vmem>>, vector<2x64xf32>,
    } else {
    }
    %c0 = arith.constant 0 : index
    %c0_1 = arith.constant 0 : index
    %3 = vector.load %arg1[%c0, %c0_1] : memref<16x32xbf16, #tpu.memory_space<vmem>>, vector<16x32xbf16>
    %c0_2 = arith.constant 0 : index
    %c0_3 = arith.constant 0 : index
    %4 = vector.load %arg2[%c0_2, %c0_3] : memref<32x256xbf16, #tpu.memory_space<vmem>>, vector<32x256xbf16>
    %cst = arith.constant dense<0.000000e+00> : vector<16x256xf32>
    %5 = tpu.matmul %3, %4, %cst {dimension_numbers = #tpu.dot_dimension_numbers<[1], [0], [0], [1], [0, 0, 1, 1], [], []>} : vector<16x32xbf16>, vector<32x256xbf16>, vector<16x256xf32> -> vector<16x256xf32>
    %c0_4 = arith.constant 0 : index
    %c0_5 = arith.constant 0 : index
    %6 = vector.load %arg3[%c0_4, %c0_5] : memref<1x256xf32, #tpu.memory_space<vmem>>, vector<1x256xf32>
    %7 = vector.broadcast %6 : vector<1x256xf32> to vector<16x256xf32>
    %8 = arith.addf %5, %7 : vector<16x256xf32>
    %c0_6 = arith.constant 0 : index
    %c0_7 = arith.constant 0 : index
    %9 = vector.load %arg7[%c0_6, %c0_7] : memref<16x256xf32, #tpu.memory_space<vmem>>, vector<16x256xf32>
    tpu.vector_store %arg7[%c0_6, %c0_7], %8 {strides = array<i32>} : memref<16x256xf32, #tpu.memory_space<vmem>>, vector<16x256xf32>,
    %c0_8 = arith.constant 0 : index
    %c0_9 = arith.constant 0 : index
    %10 = vector.load %arg4[%c0_8, %c0_9] : memref<64x256xbf16, #tpu.memory_space<vmem>>, vector<64x256xbf16>
    %c0_10 = arith.constant 0 : index
    %c0_11 = arith.constant 0 : index
    %11 = vector.load %arg8[%c0_10, %c0_11] : memref<2x64xf32, #tpu.memory_space<vmem>>, vector<2x64xf32>
    %c0_12 = arith.constant 0 : index
    %c0_13 = arith.constant 0 : index
    %12 = vector.load %arg9[%c0_12, %c0_13] : memref<2x64xf32, #tpu.memory_space<vmem>>, vector<2x64xf32>
    %c0_i32_14 = arith.constant 0 : i32
    %c2_i32 = arith.constant 2 : i32
    %13 = arith.muli %c0_i32_14, %c2_i32 : i32
    %14 = arith.index_cast %13 : i32 to index
    %c0_15 = arith.constant 0 : index
    %15 = vector.load %arg7[%14, %c0_15] : memref<16x256xf32, #tpu.memory_space<vmem>>, vector<2x256xf32>
    %16 = arith.truncf %11 : vector<2x64xf32> to vector<2x64xbf16>
    %cst_16 = arith.constant dense<0.000000e+00> : vector<2x256xf32>
    %17 = tpu.matmul %16, %10, %cst_16 {dimension_numbers = #tpu.dot_dimension_numbers<[1], [0], [0], [1], [0, 0, 1, 1], [], []>} : vector<2x64xbf16>, vector<64x256xbf16>, vector<2x256xf32> -> vector<2x256xf32>
    %18 = arith.addf %15, %17 : vector<2x256xf32>
    %19 = vector.extract_strided_slice %18 {offsets = [0, 0], sizes = [2, 64], strides = [1, 1]} : vector<2x256xf32> to vector<2x64xf32>
    %20 = arith.negf %19 : vector<2x64xf32>
    %21 = math.exp %20 : vector<2x64xf32>
    %cst_17 = arith.constant 1.000000e+00 : f32
    %22 = vector.broadcast %cst_17 : f32 to vector<2x64xf32>
    %23 = arith.addf %22, %21 : vector<2x64xf32>
    %24 = arith.divf %22, %23 : vector<2x64xf32>
    %25 = vector.extract_strided_slice %18 {offsets = [0, 64], sizes = [2, 64], strides = [1, 1]} : vector<2x256xf32> to vector<2x64xf32>
    %26 = arith.negf %25 : vector<2x64xf32>
    %27 = math.exp %26 : vector<2x64xf32>
    %cst_18 = arith.constant 1.000000e+00 : f32
    %28 = vector.broadcast %cst_18 : f32 to vector<2x64xf32>
    %29 = arith.addf %28, %27 : vector<2x64xf32>
    %30 = arith.divf %28, %29 : vector<2x64xf32>
    %31 = vector.extract_strided_slice %18 {offsets = [0, 128], sizes = [2, 64], strides = [1, 1]} : vector<2x256xf32> to vector<2x64xf32>
    %32 = math.tanh %31 : vector<2x64xf32>
    %33 = vector.extract_strided_slice %18 {offsets = [0, 192], sizes = [2, 64], strides = [1, 1]} : vector<2x256xf32> to vector<2x64xf32>
    %34 = arith.negf %33 : vector<2x64xf32>
    %35 = math.exp %34 : vector<2x64xf32>
    %cst_19 = arith.constant 1.000000e+00 : f32
    %36 = vector.broadcast %cst_19 : f32 to vector<2x64xf32>
    %37 = arith.addf %36, %35 : vector<2x64xf32>
    %38 = arith.divf %36, %37 : vector<2x64xf32>
    %39 = arith.mulf %30, %12 : vector<2x64xf32>
    %40 = arith.mulf %24, %32 : vector<2x64xf32>
    %41 = arith.addf %39, %40 : vector<2x64xf32>
    %42 = math.tanh %41 : vector<2x64xf32>
    %43 = arith.mulf %38, %42 : vector<2x64xf32>
    %44 = arith.truncf %43 : vector<2x64xf32> to vector<2x64xbf16>
    %45 = vector.extract_strided_slice %44 {offsets = [0, 0], sizes = [2, 32], strides = [1, 1]} : vector<2x64xbf16> to vector<2x32xbf16>
    %c2_i32_20 = arith.constant 2 : i32
    %46 = arith.muli %c0_i32_14, %c2_i32_20 : i32
    %47 = arith.index_cast %46 : i32 to index
    %c0_21 = arith.constant 0 : index
    %48 = vector.load %arg5[%47, %c0_21] : memref<16x32xbf16, #tpu.memory_space<vmem>>, vector<2x32xbf16>
    tpu.vector_store %arg5[%47, %c0_21], %45 {strides = array<i32>} : memref<16x32xbf16, #tpu.memory_space<vmem>>, vector<2x32xbf16>,
    %49 = vector.extract_strided_slice %44 {offsets = [0, 32], sizes = [2, 32], strides = [1, 1]} : vector<2x64xbf16> to vector<2x32xbf16>
    %c7_i32 = arith.constant 7 : i32
    %50 = arith.subi %c7_i32, %c0_i32_14 : i32
    %c2_i32_22 = arith.constant 2 : i32
    %51 = arith.muli %50, %c2_i32_22 : i32
    %52 = arith.index_cast %51 : i32 to index
    %c0_23 = arith.constant 0 : index
    %53 = vector.load %arg6[%52, %c0_23] : memref<16x32xbf16, #tpu.memory_space<vmem>>, vector<2x32xbf16>
    tpu.vector_store %arg6[%52, %c0_23], %49 {strides = array<i32>} : memref<16x32xbf16, #tpu.memory_space<vmem>>, vector<2x32xbf16>,
    %c1_i32 = arith.constant 1 : i32
    %c2_i32_24 = arith.constant 2 : i32
    %54 = arith.muli %c1_i32, %c2_i32_24 : i32
    %55 = arith.index_cast %54 : i32 to index
    %c0_25 = arith.constant 0 : index
    %56 = vector.load %arg7[%55, %c0_25] : memref<16x256xf32, #tpu.memory_space<vmem>>, vector<2x256xf32>
    %57 = arith.truncf %43 : vector<2x64xf32> to vector<2x64xbf16>
    %cst_26 = arith.constant dense<0.000000e+00> : vector<2x256xf32>
    %58 = tpu.matmul %57, %10, %cst_26 {dimension_numbers = #tpu.dot_dimension_numbers<[1], [0], [0], [1], [0, 0, 1, 1], [], []>} : vector<2x64xbf16>, vector<64x256xbf16>, vector<2x256xf32> -> vector<2x256xf32>
    %59 = arith.addf %56, %58 : vector<2x256xf32>
    %60 = vector.extract_strided_slice %59 {offsets = [0, 0], sizes = [2, 64], strides = [1, 1]} : vector<2x256xf32> to vector<2x64xf32>
    %61 = arith.negf %60 : vector<2x64xf32>
    %62 = math.exp %61 : vector<2x64xf32>
    %cst_27 = arith.constant 1.000000e+00 : f32
    %63 = vector.broadcast %cst_27 : f32 to vector<2x64xf32>
    %64 = arith.addf %63, %62 : vector<2x64xf32>
    %65 = arith.divf %63, %64 : vector<2x64xf32>
    %66 = vector.extract_strided_slice %59 {offsets = [0, 64], sizes = [2, 64], strides = [1, 1]} : vector<2x256xf32> to vector<2x64xf32>
    %67 = arith.negf %66 : vector<2x64xf32>
    %68 = math.exp %67 : vector<2x64xf32>
    %cst_28 = arith.constant 1.000000e+00 : f32
    %69 = vector.broadcast %cst_28 : f32 to vector<2x64xf32>
    %70 = arith.addf %69, %68 : vector<2x64xf32>
    %71 = arith.divf %69, %70 : vector<2x64xf32>
    %72 = vector.extract_strided_slice %59 {offsets = [0, 128], sizes = [2, 64], strides = [1, 1]} : vector<2x256xf32> to vector<2x64xf32>
    %73 = math.tanh %72 : vector<2x64xf32>
    %74 = vector.extract_strided_slice %59 {offsets = [0, 192], sizes = [2, 64], strides = [1, 1]} : vector<2x256xf32> to vector<2x64xf32>
    %75 = arith.negf %74 : vector<2x64xf32>
    %76 = math.exp %75 : vector<2x64xf32>
    %cst_29 = arith.constant 1.000000e+00 : f32
    %77 = vector.broadcast %cst_29 : f32 to vector<2x64xf32>
    %78 = arith.addf %77, %76 : vector<2x64xf32>
    %79 = arith.divf %77, %78 : vector<2x64xf32>
    %80 = arith.mulf %71, %41 : vector<2x64xf32>
    %81 = arith.mulf %65, %73 : vector<2x64xf32>
    %82 = arith.addf %80, %81 : vector<2x64xf32>
    %83 = math.tanh %82 : vector<2x64xf32>
    %84 = arith.mulf %79, %83 : vector<2x64xf32>
    %85 = arith.truncf %84 : vector<2x64xf32> to vector<2x64xbf16>
    %86 = vector.extract_strided_slice %85 {offsets = [0, 0], sizes = [2, 32], strides = [1, 1]} : vector<2x64xbf16> to vector<2x32xbf16>
    %c2_i32_30 = arith.constant 2 : i32
    %87 = arith.muli %c1_i32, %c2_i32_30 : i32
    %88 = arith.index_cast %87 : i32 to index
    %c0_31 = arith.constant 0 : index
    %89 = vector.load %arg5[%88, %c0_31] : memref<16x32xbf16, #tpu.memory_space<vmem>>, vector<2x32xbf16>
    tpu.vector_store %arg5[%88, %c0_31], %86 {strides = array<i32>} : memref<16x32xbf16, #tpu.memory_space<vmem>>, vector<2x32xbf16>,
    %90 = vector.extract_strided_slice %85 {offsets = [0, 32], sizes = [2, 32], strides = [1, 1]} : vector<2x64xbf16> to vector<2x32xbf16>
    %c7_i32_32 = arith.constant 7 : i32
    %91 = arith.subi %c7_i32_32, %c1_i32 : i32
    %c2_i32_33 = arith.constant 2 : i32
    %92 = arith.muli %91, %c2_i32_33 : i32
    %93 = arith.index_cast %92 : i32 to index
    %c0_34 = arith.constant 0 : index
    %94 = vector.load %arg6[%93, %c0_34] : memref<16x32xbf16, #tpu.memory_space<vmem>>, vector<2x32xbf16>
    tpu.vector_store %arg6[%93, %c0_34], %90 {strides = array<i32>} : memref<16x32xbf16, #tpu.memory_space<vmem>>, vector<2x32xbf16>,
    %c2_i32_35 = arith.constant 2 : i32
    %c2_i32_36 = arith.constant 2 : i32
    %95 = arith.muli %c2_i32_35, %c2_i32_36 : i32
    %96 = arith.index_cast %95 : i32 to index
    %c0_37 = arith.constant 0 : index
    %97 = vector.load %arg7[%96, %c0_37] : memref<16x256xf32, #tpu.memory_space<vmem>>, vector<2x256xf32>
    %98 = arith.truncf %84 : vector<2x64xf32> to vector<2x64xbf16>
    %cst_38 = arith.constant dense<0.000000e+00> : vector<2x256xf32>
    %99 = tpu.matmul %98, %10, %cst_38 {dimension_numbers = #tpu.dot_dimension_numbers<[1], [0], [0], [1], [0, 0, 1, 1], [], []>} : vector<2x64xbf16>, vector<64x256xbf16>, vector<2x256xf32> -> vector<2x256xf32>
    %100 = arith.addf %97, %99 : vector<2x256xf32>
    %101 = vector.extract_strided_slice %100 {offsets = [0, 0], sizes = [2, 64], strides = [1, 1]} : vector<2x256xf32> to vector<2x64xf32>
    %102 = arith.negf %101 : vector<2x64xf32>
    %103 = math.exp %102 : vector<2x64xf32>
    %cst_39 = arith.constant 1.000000e+00 : f32
    %104 = vector.broadcast %cst_39 : f32 to vector<2x64xf32>
    %105 = arith.addf %104, %103 : vector<2x64xf32>
    %106 = arith.divf %104, %105 : vector<2x64xf32>
    %107 = vector.extract_strided_slice %100 {offsets = [0, 64], sizes = [2, 64], strides = [1, 1]} : vector<2x256xf32> to vector<2x64xf32>
    %108 = arith.negf %107 : vector<2x64xf32>
    %109 = math.exp %108 : vector<2x64xf32>
    %cst_40 = arith.constant 1.000000e+00 : f32
    %110 = vector.broadcast %cst_40 : f32 to vector<2x64xf32>
    %111 = arith.addf %110, %109 : vector<2x64xf32>
    %112 = arith.divf %110, %111 : vector<2x64xf32>
    %113 = vector.extract_strided_slice %100 {offsets = [0, 128], sizes = [2, 64], strides = [1, 1]} : vector<2x256xf32> to vector<2x64xf32>
    %114 = math.tanh %113 : vector<2x64xf32>
    %115 = vector.extract_strided_slice %100 {offsets = [0, 192], sizes = [2, 64], strides = [1, 1]} : vector<2x256xf32> to vector<2x64xf32>
    %116 = arith.negf %115 : vector<2x64xf32>
    %117 = math.exp %116 : vector<2x64xf32>
    %cst_41 = arith.constant 1.000000e+00 : f32
    %118 = vector.broadcast %cst_41 : f32 to vector<2x64xf32>
    %119 = arith.addf %118, %117 : vector<2x64xf32>
    %120 = arith.divf %118, %119 : vector<2x64xf32>
    %121 = arith.mulf %112, %82 : vector<2x64xf32>
    %122 = arith.mulf %106, %114 : vector<2x64xf32>
    %123 = arith.addf %121, %122 : vector<2x64xf32>
    %124 = math.tanh %123 : vector<2x64xf32>
    %125 = arith.mulf %120, %124 : vector<2x64xf32>
    %126 = arith.truncf %125 : vector<2x64xf32> to vector<2x64xbf16>
    %127 = vector.extract_strided_slice %126 {offsets = [0, 0], sizes = [2, 32], strides = [1, 1]} : vector<2x64xbf16> to vector<2x32xbf16>
    %c2_i32_42 = arith.constant 2 : i32
    %128 = arith.muli %c2_i32_35, %c2_i32_42 : i32
    %129 = arith.index_cast %128 : i32 to index
    %c0_43 = arith.constant 0 : index
    %130 = vector.load %arg5[%129, %c0_43] : memref<16x32xbf16, #tpu.memory_space<vmem>>, vector<2x32xbf16>
    tpu.vector_store %arg5[%129, %c0_43], %127 {strides = array<i32>} : memref<16x32xbf16, #tpu.memory_space<vmem>>, vector<2x32xbf16>,
    %131 = vector.extract_strided_slice %126 {offsets = [0, 32], sizes = [2, 32], strides = [1, 1]} : vector<2x64xbf16> to vector<2x32xbf16>
    %c7_i32_44 = arith.constant 7 : i32
    %132 = arith.subi %c7_i32_44, %c2_i32_35 : i32
    %c2_i32_45 = arith.constant 2 : i32
    %133 = arith.muli %132, %c2_i32_45 : i32
    %134 = arith.index_cast %133 : i32 to index
    %c0_46 = arith.constant 0 : index
    %135 = vector.load %arg6[%134, %c0_46] : memref<16x32xbf16, #tpu.memory_space<vmem>>, vector<2x32xbf16>
    tpu.vector_store %arg6[%134, %c0_46], %131 {strides = array<i32>} : memref<16x32xbf16, #tpu.memory_space<vmem>>, vector<2x32xbf16>,
    %c3_i32 = arith.constant 3 : i32
    %c2_i32_47 = arith.constant 2 : i32
    %136 = arith.muli %c3_i32, %c2_i32_47 : i32
    %137 = arith.index_cast %136 : i32 to index
    %c0_48 = arith.constant 0 : index
    %138 = vector.load %arg7[%137, %c0_48] : memref<16x256xf32, #tpu.memory_space<vmem>>, vector<2x256xf32>
    %139 = arith.truncf %125 : vector<2x64xf32> to vector<2x64xbf16>
    %cst_49 = arith.constant dense<0.000000e+00> : vector<2x256xf32>
    %140 = tpu.matmul %139, %10, %cst_49 {dimension_numbers = #tpu.dot_dimension_numbers<[1], [0], [0], [1], [0, 0, 1, 1], [], []>} : vector<2x64xbf16>, vector<64x256xbf16>, vector<2x256xf32> -> vector<2x256xf32>
    %141 = arith.addf %138, %140 : vector<2x256xf32>
    %142 = vector.extract_strided_slice %141 {offsets = [0, 0], sizes = [2, 64], strides = [1, 1]} : vector<2x256xf32> to vector<2x64xf32>
    %143 = arith.negf %142 : vector<2x64xf32>
    %144 = math.exp %143 : vector<2x64xf32>
    %cst_50 = arith.constant 1.000000e+00 : f32
    %145 = vector.broadcast %cst_50 : f32 to vector<2x64xf32>
    %146 = arith.addf %145, %144 : vector<2x64xf32>
    %147 = arith.divf %145, %146 : vector<2x64xf32>
    %148 = vector.extract_strided_slice %141 {offsets = [0, 64], sizes = [2, 64], strides = [1, 1]} : vector<2x256xf32> to vector<2x64xf32>
    %149 = arith.negf %148 : vector<2x64xf32>
    %150 = math.exp %149 : vector<2x64xf32>
    %cst_51 = arith.constant 1.000000e+00 : f32
    %151 = vector.broadcast %cst_51 : f32 to vector<2x64xf32>
    %152 = arith.addf %151, %150 : vector<2x64xf32>
    %153 = arith.divf %151, %152 : vector<2x64xf32>
    %154 = vector.extract_strided_slice %141 {offsets = [0, 128], sizes = [2, 64], strides = [1, 1]} : vector<2x256xf32> to vector<2x64xf32>
    %155 = math.tanh %154 : vector<2x64xf32>
    %156 = vector.extract_strided_slice %141 {offsets = [0, 192], sizes = [2, 64], strides = [1, 1]} : vector<2x256xf32> to vector<2x64xf32>
    %157 = arith.negf %156 : vector<2x64xf32>
    %158 = math.exp %157 : vector<2x64xf32>
    %cst_52 = arith.constant 1.000000e+00 : f32
    %159 = vector.broadcast %cst_52 : f32 to vector<2x64xf32>
    %160 = arith.addf %159, %158 : vector<2x64xf32>
    %161 = arith.divf %159, %160 : vector<2x64xf32>
    %162 = arith.mulf %153, %123 : vector<2x64xf32>
    %163 = arith.mulf %147, %155 : vector<2x64xf32>
    %164 = arith.addf %162, %163 : vector<2x64xf32>
    %165 = math.tanh %164 : vector<2x64xf32>
    %166 = arith.mulf %161, %165 : vector<2x64xf32>
    %167 = arith.truncf %166 : vector<2x64xf32> to vector<2x64xbf16>
    %168 = vector.extract_strided_slice %167 {offsets = [0, 0], sizes = [2, 32], strides = [1, 1]} : vector<2x64xbf16> to vector<2x32xbf16>
    %c2_i32_53 = arith.constant 2 : i32
    %169 = arith.muli %c3_i32, %c2_i32_53 : i32
    %170 = arith.index_cast %169 : i32 to index
    %c0_54 = arith.constant 0 : index
    %171 = vector.load %arg5[%170, %c0_54] : memref<16x32xbf16, #tpu.memory_space<vmem>>, vector<2x32xbf16>
    tpu.vector_store %arg5[%170, %c0_54], %168 {strides = array<i32>} : memref<16x32xbf16, #tpu.memory_space<vmem>>, vector<2x32xbf16>,
    %172 = vector.extract_strided_slice %167 {offsets = [0, 32], sizes = [2, 32], strides = [1, 1]} : vector<2x64xbf16> to vector<2x32xbf16>
    %c7_i32_55 = arith.constant 7 : i32
    %173 = arith.subi %c7_i32_55, %c3_i32 : i32
    %c2_i32_56 = arith.constant 2 : i32
    %174 = arith.muli %173, %c2_i32_56 : i32
    %175 = arith.index_cast %174 : i32 to index
    %c0_57 = arith.constant 0 : index
    %176 = vector.load %arg6[%175, %c0_57] : memref<16x32xbf16, #tpu.memory_space<vmem>>, vector<2x32xbf16>
    tpu.vector_store %arg6[%175, %c0_57], %172 {strides = array<i32>} : memref<16x32xbf16, #tpu.memory_space<vmem>>, vector<2x32xbf16>,
    %c4_i32 = arith.constant 4 : i32
    %c2_i32_58 = arith.constant 2 : i32
    %177 = arith.muli %c4_i32, %c2_i32_58 : i32
    %178 = arith.index_cast %177 : i32 to index
    %c0_59 = arith.constant 0 : index
    %179 = vector.load %arg7[%178, %c0_59] : memref<16x256xf32, #tpu.memory_space<vmem>>, vector<2x256xf32>
    %180 = arith.truncf %166 : vector<2x64xf32> to vector<2x64xbf16>
    %cst_60 = arith.constant dense<0.000000e+00> : vector<2x256xf32>
    %181 = tpu.matmul %180, %10, %cst_60 {dimension_numbers = #tpu.dot_dimension_numbers<[1], [0], [0], [1], [0, 0, 1, 1], [], []>} : vector<2x64xbf16>, vector<64x256xbf16>, vector<2x256xf32> -> vector<2x256xf32>
    %182 = arith.addf %179, %181 : vector<2x256xf32>
    %183 = vector.extract_strided_slice %182 {offsets = [0, 0], sizes = [2, 64], strides = [1, 1]} : vector<2x256xf32> to vector<2x64xf32>
    %184 = arith.negf %183 : vector<2x64xf32>
    %185 = math.exp %184 : vector<2x64xf32>
    %cst_61 = arith.constant 1.000000e+00 : f32
    %186 = vector.broadcast %cst_61 : f32 to vector<2x64xf32>
    %187 = arith.addf %186, %185 : vector<2x64xf32>
    %188 = arith.divf %186, %187 : vector<2x64xf32>
    %189 = vector.extract_strided_slice %182 {offsets = [0, 64], sizes = [2, 64], strides = [1, 1]} : vector<2x256xf32> to vector<2x64xf32>
    %190 = arith.negf %189 : vector<2x64xf32>
    %191 = math.exp %190 : vector<2x64xf32>
    %cst_62 = arith.constant 1.000000e+00 : f32
    %192 = vector.broadcast %cst_62 : f32 to vector<2x64xf32>
    %193 = arith.addf %192, %191 : vector<2x64xf32>
    %194 = arith.divf %192, %193 : vector<2x64xf32>
    %195 = vector.extract_strided_slice %182 {offsets = [0, 128], sizes = [2, 64], strides = [1, 1]} : vector<2x256xf32> to vector<2x64xf32>
    %196 = math.tanh %195 : vector<2x64xf32>
    %197 = vector.extract_strided_slice %182 {offsets = [0, 192], sizes = [2, 64], strides = [1, 1]} : vector<2x256xf32> to vector<2x64xf32>
    %198 = arith.negf %197 : vector<2x64xf32>
    %199 = math.exp %198 : vector<2x64xf32>
    %cst_63 = arith.constant 1.000000e+00 : f32
    %200 = vector.broadcast %cst_63 : f32 to vector<2x64xf32>
    %201 = arith.addf %200, %199 : vector<2x64xf32>
    %202 = arith.divf %200, %201 : vector<2x64xf32>
    %203 = arith.mulf %194, %164 : vector<2x64xf32>
    %204 = arith.mulf %188, %196 : vector<2x64xf32>
    %205 = arith.addf %203, %204 : vector<2x64xf32>
    %206 = math.tanh %205 : vector<2x64xf32>
    %207 = arith.mulf %202, %206 : vector<2x64xf32>
    %208 = arith.truncf %207 : vector<2x64xf32> to vector<2x64xbf16>
    %209 = vector.extract_strided_slice %208 {offsets = [0, 0], sizes = [2, 32], strides = [1, 1]} : vector<2x64xbf16> to vector<2x32xbf16>
    %c2_i32_64 = arith.constant 2 : i32
    %210 = arith.muli %c4_i32, %c2_i32_64 : i32
    %211 = arith.index_cast %210 : i32 to index
    %c0_65 = arith.constant 0 : index
    %212 = vector.load %arg5[%211, %c0_65] : memref<16x32xbf16, #tpu.memory_space<vmem>>, vector<2x32xbf16>
    tpu.vector_store %arg5[%211, %c0_65], %209 {strides = array<i32>} : memref<16x32xbf16, #tpu.memory_space<vmem>>, vector<2x32xbf16>,
    %213 = vector.extract_strided_slice %208 {offsets = [0, 32], sizes = [2, 32], strides = [1, 1]} : vector<2x64xbf16> to vector<2x32xbf16>
    %c7_i32_66 = arith.constant 7 : i32
    %214 = arith.subi %c7_i32_66, %c4_i32 : i32
    %c2_i32_67 = arith.constant 2 : i32
    %215 = arith.muli %214, %c2_i32_67 : i32
    %216 = arith.index_cast %215 : i32 to index
    %c0_68 = arith.constant 0 : index
    %217 = vector.load %arg6[%216, %c0_68] : memref<16x32xbf16, #tpu.memory_space<vmem>>, vector<2x32xbf16>
    tpu.vector_store %arg6[%216, %c0_68], %213 {strides = array<i32>} : memref<16x32xbf16, #tpu.memory_space<vmem>>, vector<2x32xbf16>,
    %c5_i32 = arith.constant 5 : i32
    %c2_i32_69 = arith.constant 2 : i32
    %218 = arith.muli %c5_i32, %c2_i32_69 : i32
    %219 = arith.index_cast %218 : i32 to index
    %c0_70 = arith.constant 0 : index
    %220 = vector.load %arg7[%219, %c0_70] : memref<16x256xf32, #tpu.memory_space<vmem>>, vector<2x256xf32>
    %221 = arith.truncf %207 : vector<2x64xf32> to vector<2x64xbf16>
    %cst_71 = arith.constant dense<0.000000e+00> : vector<2x256xf32>
    %222 = tpu.matmul %221, %10, %cst_71 {dimension_numbers = #tpu.dot_dimension_numbers<[1], [0], [0], [1], [0, 0, 1, 1], [], []>} : vector<2x64xbf16>, vector<64x256xbf16>, vector<2x256xf32> -> vector<2x256xf32>
    %223 = arith.addf %220, %222 : vector<2x256xf32>
    %224 = vector.extract_strided_slice %223 {offsets = [0, 0], sizes = [2, 64], strides = [1, 1]} : vector<2x256xf32> to vector<2x64xf32>
    %225 = arith.negf %224 : vector<2x64xf32>
    %226 = math.exp %225 : vector<2x64xf32>
    %cst_72 = arith.constant 1.000000e+00 : f32
    %227 = vector.broadcast %cst_72 : f32 to vector<2x64xf32>
    %228 = arith.addf %227, %226 : vector<2x64xf32>
    %229 = arith.divf %227, %228 : vector<2x64xf32>
    %230 = vector.extract_strided_slice %223 {offsets = [0, 64], sizes = [2, 64], strides = [1, 1]} : vector<2x256xf32> to vector<2x64xf32>
    %231 = arith.negf %230 : vector<2x64xf32>
    %232 = math.exp %231 : vector<2x64xf32>
    %cst_73 = arith.constant 1.000000e+00 : f32
    %233 = vector.broadcast %cst_73 : f32 to vector<2x64xf32>
    %234 = arith.addf %233, %232 : vector<2x64xf32>
    %235 = arith.divf %233, %234 : vector<2x64xf32>
    %236 = vector.extract_strided_slice %223 {offsets = [0, 128], sizes = [2, 64], strides = [1, 1]} : vector<2x256xf32> to vector<2x64xf32>
    %237 = math.tanh %236 : vector<2x64xf32>
    %238 = vector.extract_strided_slice %223 {offsets = [0, 192], sizes = [2, 64], strides = [1, 1]} : vector<2x256xf32> to vector<2x64xf32>
    %239 = arith.negf %238 : vector<2x64xf32>
    %240 = math.exp %239 : vector<2x64xf32>
    %cst_74 = arith.constant 1.000000e+00 : f32
    %241 = vector.broadcast %cst_74 : f32 to vector<2x64xf32>
    %242 = arith.addf %241, %240 : vector<2x64xf32>
    %243 = arith.divf %241, %242 : vector<2x64xf32>
    %244 = arith.mulf %235, %205 : vector<2x64xf32>
    %245 = arith.mulf %229, %237 : vector<2x64xf32>
    %246 = arith.addf %244, %245 : vector<2x64xf32>
    %247 = math.tanh %246 : vector<2x64xf32>
    %248 = arith.mulf %243, %247 : vector<2x64xf32>
    %249 = arith.truncf %248 : vector<2x64xf32> to vector<2x64xbf16>
    %250 = vector.extract_strided_slice %249 {offsets = [0, 0], sizes = [2, 32], strides = [1, 1]} : vector<2x64xbf16> to vector<2x32xbf16>
    %c2_i32_75 = arith.constant 2 : i32
    %251 = arith.muli %c5_i32, %c2_i32_75 : i32
    %252 = arith.index_cast %251 : i32 to index
    %c0_76 = arith.constant 0 : index
    %253 = vector.load %arg5[%252, %c0_76] : memref<16x32xbf16, #tpu.memory_space<vmem>>, vector<2x32xbf16>
    tpu.vector_store %arg5[%252, %c0_76], %250 {strides = array<i32>} : memref<16x32xbf16, #tpu.memory_space<vmem>>, vector<2x32xbf16>,
    %254 = vector.extract_strided_slice %249 {offsets = [0, 32], sizes = [2, 32], strides = [1, 1]} : vector<2x64xbf16> to vector<2x32xbf16>
    %c7_i32_77 = arith.constant 7 : i32
    %255 = arith.subi %c7_i32_77, %c5_i32 : i32
    %c2_i32_78 = arith.constant 2 : i32
    %256 = arith.muli %255, %c2_i32_78 : i32
    %257 = arith.index_cast %256 : i32 to index
    %c0_79 = arith.constant 0 : index
    %258 = vector.load %arg6[%257, %c0_79] : memref<16x32xbf16, #tpu.memory_space<vmem>>, vector<2x32xbf16>
    tpu.vector_store %arg6[%257, %c0_79], %254 {strides = array<i32>} : memref<16x32xbf16, #tpu.memory_space<vmem>>, vector<2x32xbf16>,
    %c6_i32 = arith.constant 6 : i32
    %c2_i32_80 = arith.constant 2 : i32
    %259 = arith.muli %c6_i32, %c2_i32_80 : i32
    %260 = arith.index_cast %259 : i32 to index
    %c0_81 = arith.constant 0 : index
    %261 = vector.load %arg7[%260, %c0_81] : memref<16x256xf32, #tpu.memory_space<vmem>>, vector<2x256xf32>
    %262 = arith.truncf %248 : vector<2x64xf32> to vector<2x64xbf16>
    %cst_82 = arith.constant dense<0.000000e+00> : vector<2x256xf32>
    %263 = tpu.matmul %262, %10, %cst_82 {dimension_numbers = #tpu.dot_dimension_numbers<[1], [0], [0], [1], [0, 0, 1, 1], [], []>} : vector<2x64xbf16>, vector<64x256xbf16>, vector<2x256xf32> -> vector<2x256xf32>
    %264 = arith.addf %261, %263 : vector<2x256xf32>
    %265 = vector.extract_strided_slice %264 {offsets = [0, 0], sizes = [2, 64], strides = [1, 1]} : vector<2x256xf32> to vector<2x64xf32>
    %266 = arith.negf %265 : vector<2x64xf32>
    %267 = math.exp %266 : vector<2x64xf32>
    %cst_83 = arith.constant 1.000000e+00 : f32
    %268 = vector.broadcast %cst_83 : f32 to vector<2x64xf32>
    %269 = arith.addf %268, %267 : vector<2x64xf32>
    %270 = arith.divf %268, %269 : vector<2x64xf32>
    %271 = vector.extract_strided_slice %264 {offsets = [0, 64], sizes = [2, 64], strides = [1, 1]} : vector<2x256xf32> to vector<2x64xf32>
    %272 = arith.negf %271 : vector<2x64xf32>
    %273 = math.exp %272 : vector<2x64xf32>
    %cst_84 = arith.constant 1.000000e+00 : f32
    %274 = vector.broadcast %cst_84 : f32 to vector<2x64xf32>
    %275 = arith.addf %274, %273 : vector<2x64xf32>
    %276 = arith.divf %274, %275 : vector<2x64xf32>
    %277 = vector.extract_strided_slice %264 {offsets = [0, 128], sizes = [2, 64], strides = [1, 1]} : vector<2x256xf32> to vector<2x64xf32>
    %278 = math.tanh %277 : vector<2x64xf32>
    %279 = vector.extract_strided_slice %264 {offsets = [0, 192], sizes = [2, 64], strides = [1, 1]} : vector<2x256xf32> to vector<2x64xf32>
    %280 = arith.negf %279 : vector<2x64xf32>
    %281 = math.exp %280 : vector<2x64xf32>
    %cst_85 = arith.constant 1.000000e+00 : f32
    %282 = vector.broadcast %cst_85 : f32 to vector<2x64xf32>
    %283 = arith.addf %282, %281 : vector<2x64xf32>
    %284 = arith.divf %282, %283 : vector<2x64xf32>
    %285 = arith.mulf %276, %246 : vector<2x64xf32>
    %286 = arith.mulf %270, %278 : vector<2x64xf32>
    %287 = arith.addf %285, %286 : vector<2x64xf32>
    %288 = math.tanh %287 : vector<2x64xf32>
    %289 = arith.mulf %284, %288 : vector<2x64xf32>
    %290 = arith.truncf %289 : vector<2x64xf32> to vector<2x64xbf16>
    %291 = vector.extract_strided_slice %290 {offsets = [0, 0], sizes = [2, 32], strides = [1, 1]} : vector<2x64xbf16> to vector<2x32xbf16>
    %c2_i32_86 = arith.constant 2 : i32
    %292 = arith.muli %c6_i32, %c2_i32_86 : i32
    %293 = arith.index_cast %292 : i32 to index
    %c0_87 = arith.constant 0 : index
    %294 = vector.load %arg5[%293, %c0_87] : memref<16x32xbf16, #tpu.memory_space<vmem>>, vector<2x32xbf16>
    tpu.vector_store %arg5[%293, %c0_87], %291 {strides = array<i32>} : memref<16x32xbf16, #tpu.memory_space<vmem>>, vector<2x32xbf16>,
    %295 = vector.extract_strided_slice %290 {offsets = [0, 32], sizes = [2, 32], strides = [1, 1]} : vector<2x64xbf16> to vector<2x32xbf16>
    %c7_i32_88 = arith.constant 7 : i32
    %296 = arith.subi %c7_i32_88, %c6_i32 : i32
    %c2_i32_89 = arith.constant 2 : i32
    %297 = arith.muli %296, %c2_i32_89 : i32
    %298 = arith.index_cast %297 : i32 to index
    %c0_90 = arith.constant 0 : index
    %299 = vector.load %arg6[%298, %c0_90] : memref<16x32xbf16, #tpu.memory_space<vmem>>, vector<2x32xbf16>
    tpu.vector_store %arg6[%298, %c0_90], %295 {strides = array<i32>} : memref<16x32xbf16, #tpu.memory_space<vmem>>, vector<2x32xbf16>,
    %c7_i32_91 = arith.constant 7 : i32
    %c2_i32_92 = arith.constant 2 : i32
    %300 = arith.muli %c7_i32_91, %c2_i32_92 : i32
    %301 = arith.index_cast %300 : i32 to index
    %c0_93 = arith.constant 0 : index
    %302 = vector.load %arg7[%301, %c0_93] : memref<16x256xf32, #tpu.memory_space<vmem>>, vector<2x256xf32>
    %303 = arith.truncf %289 : vector<2x64xf32> to vector<2x64xbf16>
    %cst_94 = arith.constant dense<0.000000e+00> : vector<2x256xf32>
    %304 = tpu.matmul %303, %10, %cst_94 {dimension_numbers = #tpu.dot_dimension_numbers<[1], [0], [0], [1], [0, 0, 1, 1], [], []>} : vector<2x64xbf16>, vector<64x256xbf16>, vector<2x256xf32> -> vector<2x256xf32>
    %305 = arith.addf %302, %304 : vector<2x256xf32>
    %306 = vector.extract_strided_slice %305 {offsets = [0, 0], sizes = [2, 64], strides = [1, 1]} : vector<2x256xf32> to vector<2x64xf32>
    %307 = arith.negf %306 : vector<2x64xf32>
    %308 = math.exp %307 : vector<2x64xf32>
    %cst_95 = arith.constant 1.000000e+00 : f32
    %309 = vector.broadcast %cst_95 : f32 to vector<2x64xf32>
    %310 = arith.addf %309, %308 : vector<2x64xf32>
    %311 = arith.divf %309, %310 : vector<2x64xf32>
    %312 = vector.extract_strided_slice %305 {offsets = [0, 64], sizes = [2, 64], strides = [1, 1]} : vector<2x256xf32> to vector<2x64xf32>
    %313 = arith.negf %312 : vector<2x64xf32>
    %314 = math.exp %313 : vector<2x64xf32>
    %cst_96 = arith.constant 1.000000e+00 : f32
    %315 = vector.broadcast %cst_96 : f32 to vector<2x64xf32>
    %316 = arith.addf %315, %314 : vector<2x64xf32>
    %317 = arith.divf %315, %316 : vector<2x64xf32>
    %318 = vector.extract_strided_slice %305 {offsets = [0, 128], sizes = [2, 64], strides = [1, 1]} : vector<2x256xf32> to vector<2x64xf32>
    %319 = math.tanh %318 : vector<2x64xf32>
    %320 = vector.extract_strided_slice %305 {offsets = [0, 192], sizes = [2, 64], strides = [1, 1]} : vector<2x256xf32> to vector<2x64xf32>
    %321 = arith.negf %320 : vector<2x64xf32>
    %322 = math.exp %321 : vector<2x64xf32>
    %cst_97 = arith.constant 1.000000e+00 : f32
    %323 = vector.broadcast %cst_97 : f32 to vector<2x64xf32>
    %324 = arith.addf %323, %322 : vector<2x64xf32>
    %325 = arith.divf %323, %324 : vector<2x64xf32>
    %326 = arith.mulf %317, %287 : vector<2x64xf32>
    %327 = arith.mulf %311, %319 : vector<2x64xf32>
    %328 = arith.addf %326, %327 : vector<2x64xf32>
    %329 = math.tanh %328 : vector<2x64xf32>
    %330 = arith.mulf %325, %329 : vector<2x64xf32>
    %331 = arith.truncf %330 : vector<2x64xf32> to vector<2x64xbf16>
    %332 = vector.extract_strided_slice %331 {offsets = [0, 0], sizes = [2, 32], strides = [1, 1]} : vector<2x64xbf16> to vector<2x32xbf16>
    %c2_i32_98 = arith.constant 2 : i32
    %333 = arith.muli %c7_i32_91, %c2_i32_98 : i32
    %334 = arith.index_cast %333 : i32 to index
    %c0_99 = arith.constant 0 : index
    %335 = vector.load %arg5[%334, %c0_99] : memref<16x32xbf16, #tpu.memory_space<vmem>>, vector<2x32xbf16>
    tpu.vector_store %arg5[%334, %c0_99], %332 {strides = array<i32>} : memref<16x32xbf16, #tpu.memory_space<vmem>>, vector<2x32xbf16>,
    %336 = vector.extract_strided_slice %331 {offsets = [0, 32], sizes = [2, 32], strides = [1, 1]} : vector<2x64xbf16> to vector<2x32xbf16>
    %c7_i32_100 = arith.constant 7 : i32
    %337 = arith.subi %c7_i32_100, %c7_i32_91 : i32
    %c2_i32_101 = arith.constant 2 : i32
    %338 = arith.muli %337, %c2_i32_101 : i32
    %339 = arith.index_cast %338 : i32 to index
    %c0_102 = arith.constant 0 : index
    %340 = vector.load %arg6[%339, %c0_102] : memref<16x32xbf16, #tpu.memory_space<vmem>>, vector<2x32xbf16>
    tpu.vector_store %arg6[%339, %c0_102], %336 {strides = array<i32>} : memref<16x32xbf16, #tpu.memory_space<vmem>>, vector<2x32xbf16>,
    %c8_i32 = arith.constant 8 : i32
    %c0_103 = arith.constant 0 : index
    %c0_104 = arith.constant 0 : index
    %341 = vector.load %arg8[%c0_103, %c0_104] : memref<2x64xf32, #tpu.memory_space<vmem>>, vector<2x64xf32>
    tpu.vector_store %arg8[%c0_103, %c0_104], %330 {strides = array<i32>} : memref<2x64xf32, #tpu.memory_space<vmem>>, vector<2x64xf32>,
    %c0_105 = arith.constant 0 : index
    %c0_106 = arith.constant 0 : index
    %342 = vector.load %arg9[%c0_105, %c0_106] : memref<2x64xf32, #tpu.memory_space<vmem>>, vector<2x64xf32>
    tpu.vector_store %arg9[%c0_105, %c0_106], %328 {strides = array<i32>} : memref<2x64xf32, #tpu.memory_space<vmem>>, vector<2x64xf32>,
    return
  }
  func.func @transform_0(%arg0: i32) -> (i32, i32) {
    %c0_i32 = arith.constant 0 : i32
    %c0_i32_0 = arith.constant 0 : i32
    return %arg0, %c0_i32 : i32, i32
  }
  func.func @transform_1(%arg0: i32) -> (i32, i32) {
    %c0_i32 = arith.constant 0 : i32
    %c0_i32_0 = arith.constant 0 : i32
    %c0_i32_1 = arith.constant 0 : i32
    return %c0_i32, %c0_i32_0 : i32, i32
  }
  func.func @transform_2(%arg0: i32) -> (i32, i32) {
    %c0_i32 = arith.constant 0 : i32
    %c0_i32_0 = arith.constant 0 : i32
    %c0_i32_1 = arith.constant 0 : i32
    return %c0_i32, %c0_i32_0 : i32, i32
  }
  func.func @transform_3(%arg0: i32) -> (i32, i32) {
    %c0_i32 = arith.constant 0 : i32
    %c0_i32_0 = arith.constant 0 : i32
    %c0_i32_1 = arith.constant 0 : i32
    return %c0_i32, %c0_i32_0 : i32, i32
  }
  func.func @transform_4(%arg0: i32) -> (i32, i32) {
    %c0_i32 = arith.constant 0 : i32
    %c0_i32_0 = arith.constant 0 : i32
    return %arg0, %c0_i32 : i32, i32
  }
  func.func @transform_5(%arg0: i32) -> (i32, i32) {
    %c0_i32 = arith.constant 0 : i32
    %0 = arith.subi %c0_i32, %arg0 : i32
    %c0_i32_0 = arith.constant 0 : i32
    %c0_i32_1 = arith.constant 0 : i32
    return %0, %c0_i32_0 : i32, i32
  }
}

</mosaic_0001>

<bundles_post_ra>
// kernel: bidirectional_lstm_forward.3
= control target key start
LH: loop header
LB: loop body
LE: loop exit
PB: predicated region body
PF: predicated region fallthrough
CT: control target
= control target key end

     0   :  { %v251_v1 = vmov 0.0   ;;  %vm252_vm0 = vmmov 0   ;;  %vm51_vm1 = vcmask 261120   ;;  %s319_s0 = inlined_call_operand.vmem [shape: bf16[16,32], index: 0, kind: input, shape index: {}]   ;;  %s320_s1 = inlined_call_operand.vmem [shape: bf16[16,32], index: 1, kind: input, shape index: {}]   ;;  %s321_s2 = inlined_call_operand.vmem [shape: bf16[32,16], index: 2, kind: input, shape index: {}]   ;;  %s322_s3 = inlined_call_operand.vmem [shape: bf16[32,16], index: 3, kind: input, shape index: {}]   ;;  %s323_s4 = inlined_call_operand.vmem [shape: f32[1,16], index: 4, kind: input, shape index: {}]   ;;  %s324_s5 = inlined_call_operand.hbm [shape: f32[16,16], index: 5, kind: output, shape index: {}]  }
   0x1   :  { %v221_v0 = vld [vmem:[%s322_s3] sm:$0xff]   ;;  %200 = vmatprep.subr.bf16.mxu0 %v251_v1  ;;  %208 = vmatprep.subr.bf16.mxu1 %v251_v1  ;;  %v223_v3 = vld [vmem:[%s322_s3 + $0x8] sm:$0xff]  }
   0x2   :  { %v222_v2 = vld [vmem:[%s321_s2] sm:$0xff]   ;;  %201 = vmatpush3.bf16.msra.mxu0 %v221_v0  ;;  %204 = vmatprep.mubr.msk.bf16.mxu0 %vm252_vm0, %v251_v1  ;;  %v224_v4 = vld [vmem:[%s321_s2 + $0x8] sm:$0xff]  }
   0x3   :  { %209 = vmatpush3.bf16.msra.mxu1 %v222_v2  ;;  %202 = vmatprep.subr.bf16.mxu0 %v251_v1  ;;  %v225_v5 = vld [vmem:[%s320_s1] sm:$0xff]  }
   0x4   :  { %210 = vmatprep.subr.bf16.mxu1 %v251_v1  ;;  %212 = vmatprep.mubr.msk.bf16.mxu1 %vm252_vm0, %v251_v1  ;;  %v226_v6 = vld [vmem:[%s319_s0] sm:$0xff]  }
   0x6   :  { %203 = vmatpush3.bf16.msra.mxu0 %v223_v3 }
   0x7   :  { %10 = vsyncpa [#allocation3], 0  ;;  %211 = vmatpush3.bf16.msra.mxu1 %v224_v4  ;;  %v193_v9 = vld [vmem:[%s323_s4] ss:$0 sm:$0xff]  ;;  %s253_s1 = smov [#allocation2]   ;;  %vm166_vm2 = vcmask 130048  }
   0x8   :  { %s174_s30 = sshll.u32 %s253_s1, 4  ;;  %s175_s30 = int_to_ptr.vmem [resolvable:$true] %s174_s30 }
   0x9   :  { %205 = vmatmul.mubr.msk.bf16.vlgmr.msra.gmra.mrb[0].mxu0 %vm51_vm1, %v225_v5  ;;  %s227_s0 = scalar_lea.vmem %s175_s30, 256  ;;  %p232_p1 = scmp.lt.s32.totalorder %s175_s30, %s175_s30 }
   0xa   :  { %213 = vmatmul.mubr.msk.bf16.vlgmr.msra.gmra.mrb[0].mxu1 %vm51_vm1, %v226_v6  ;;  %p228_p0 = scmp.ne.s32.totalorder %s175_s30, %s227_s0  ;;  %p233_p2 = scmp.lt.s32.totalorder %s227_s0, %s227_s0 }
   0xc   :  { %p234_p3 = por %p233_p2, %p232_p1 }
   0xe   :  { %p235_p4 = pnand %p234_p3, %p228_p0 }
  0xdc   :  { %v89_v7 = vpop.f32.mrb[0].mxu0 }
  0xdd   :  { %v150_v8 = vpop.f32.mrb[0].mxu1  ;;  %v206_v10 = vpop.f32.mrb[1].mxu0 }
  0xde   :  { %v151_v11 = vadd.f32 %v150_v8, %v89_v7  ;;  %v214_v12 = vpop.f32.mrb[1].mxu1  ;;  %v92_v13 = vpop.f32.mrb[2].mxu0 }
  0xdf   :  { %v153_v14 = vpop.f32.mrb[2].mxu1  ;;  %v207_v15 = vpop.f32.mrb[3].mxu0 }
  0xe0   :  { %v164_v16 = vadd.f32 %v193_v9, %v151_v11  ;;  %v154_v17 = vadd.f32 %v153_v14, %v92_v13  ;;  %v215_v18 = vpop.f32.mrb[3].mxu1 }
  0xe2   :  { %167 = vst.msk [vmem:[#allocation2] sm:$0xff] %vm166_vm2, %v164_v16  ;;  %v165_v19 = vadd.f32 %v193_v9, %v154_v17 }
  0xe4   :  { %168 = vst.msk [vmem:[#allocation2 + $0x8] sm:$0xff] %vm166_vm2, %v165_v19 }
  0xe5   :  { %238 = shalt.err (!%p235_p4)
}
  0xe6   :  { %s239_s7 = scalar_lea.hbm %s324_s5, 256 }
  0xe7   :  { %p240_p5 = scmp.ne.s32.totalorder %s324_s5, %s239_s7  ;;  %p243_p6 = scmp.lt.u32.totalorder %s239_s7, %s324_s5 }
  0xe9   :  { %p245_p7 = pnand %p243_p6, %p240_p5 }
  0xeb   :  { %248 = shalt.err (!%p245_p7)
}
  0xec   :  { %s254_s12 = smov 128   ;;  %s255_s13 = smov 8  }
  0xed   :  { %180 = dma.vmem_to_hbm [thread:$0]  %s175_s30, 256, %s324_s5, [#allocation3], %s254_s12, %s254_s12, %s255_s13  }
  0xee   :  { %249 = dma.done.wait [#allocation3], 256  }
  0xef   :  { %250 = vsyncadd [#allocation3], 4294967040 }
  0xf0   :  { %184 = vsyncpa [#allocation3], 1 }

// kernel: bidirectional_lstm_forward.2
= control target key start
LH: loop header
LB: loop body
LE: loop exit
PB: predicated region body
PF: predicated region fallthrough
CT: control target
= control target key end

     0   :  { %vm38_vm0 = vcmask 517120   ;;  %v1157_v1 = vmov 0   ;;  %v1158_v2 = vmov 0.0   ;;  %vm84_vm1 = vcmask 261120   ;;  %s1160_s7 = smov 32   ;;  %s1463_s1 = inlined_call_operand.vmem [shape: bf16[32,256], index: 1, kind: input, shape index: {}]   ;;  %s1464_s3 = inlined_call_operand.vmem [shape: bf16[64,256], index: 3, kind: input, shape index: {}]   ;;  %s1465_s0 = inlined_call_operand.vmem [shape: bf16[16,32], index: 0, kind: input, shape index: {}]   ;;  %s1466_s2 = inlined_call_operand.vmem [shape: f32[1,256], index: 2, kind: input, shape index: {}]   ;;  %s1467_s4 = inlined_call_operand.vmem [shape: bf16[16,32], index: 4, kind: output, shape index: {0}]   ;;  %s1468_s5 = inlined_call_operand.vmem [shape: bf16[16,32], index: 5, kind: output, shape index: {1}]  }
   0x1   :  { %v1042_v0 = vld [vmem:[%s1463_s1 + $0x4] ss:$8 sps:$4 sm:$0xff]   ;;  %120 = vmatprep.mubr.bf16.mxu0 %v1157_v1  ;;  %224 = vmatprep.mubr.bf16.mxu1 %v1157_v1  ;;  %39 = vst.msk [vmem:[#allocation3] sm:$0x3] %vm38_vm0, %v1158_v2  ;;  %40 = vst.msk [vmem:[#allocation4] sm:$0x3] %vm38_vm0, %v1158_v2  ;;  %v49_v18 = vlaneseq }
   0x2   :  { %v1199_v3 = vld [vmem:[%s1464_s3 + $0x4] ss:$8 sps:$4 sm:$0xff]   ;;  %88 = vmatprep.subr.bf16.mxu0 %v1042_v0  ;;  %v1046_v4 = vld [vmem:[%s1463_s1] ss:$8 sps:$4 sm:$0xff]   ;;  %v1048_v6 = vld [vmem:[%s1463_s1 + $0x14] ss:$8 sps:$4 sm:$0xff]  }
   0x3   :  { %v1207_v5 = vld [vmem:[%s1464_s3] ss:$8 sps:$4 sm:$0xff]   ;;  %192 = vmatprep.subr.bf16.mxu1 %v1199_v3  ;;  %89 = vmatpush1.bf16.msra.mxu0 %v1046_v4  ;;  %v1217_v7 = vld [vmem:[%s1464_s3 + $0x14] ss:$8 sps:$4 sm:$0xff]   ;;  %v1052_v8 = vld [vmem:[%s1463_s1 + $0x10] ss:$8 sps:$4 sm:$0xff]  }
   0x4   :  { %193 = vmatpush1.bf16.msra.mxu1 %v1207_v5  ;;  %90 = vmatprep.subr.bf16.mxu0 %v1048_v6  ;;  %v1225_v9 = vld [vmem:[%s1464_s3 + $0x10] ss:$8 sps:$4 sm:$0xff]   ;;  %v1054_v10 = vld [vmem:[%s1465_s0] sm:$0xff]   ;;  %v1246_v13 = vld [vmem:[%s1464_s3 + $0x34] ss:$8 sps:$4 sm:$0xff]   ;;  %s1159_s0 = smov 64  }
   0x5   :  { %194 = vmatprep.subr.bf16.mxu1 %v1217_v7  ;;  %v1234_v11 = vld [vmem:[%s1464_s3 + $0x24] ss:$8 sps:$4 sm:$0xff]   ;;  %v1240_v12 = vld [vmem:[%s1464_s3 + $0x20] ss:$8 sps:$4 sm:$0xff]   ;;  %v1254_v15 = vld [vmem:[%s1464_s3 + $0x30] ss:$8 sps:$4 sm:$0xff]  }
   0x6   :  { %vm188_vm2 = vcmask 523264   ;;  %v50_v19 = vshrl.u32 %v49_v18, 7  ;;  %v47_v21 = vld [vmem:[%s1466_s2] sm:$0x3]  ;;  %vm268_vm3 = vcmask 253952   ;;  %vm364_vm4 = vcmask 254977  }
   0x7   :  { %91 = vmatpush1.bf16.msra.mxu0 %v1052_v8  ;;  %vm370_vm5 = vcmask 256002   ;;  %vm274_vm6 = vcmask 257027   ;;  %vm943_vm7 = vcmask 523270  }
   0x8   :  { %195 = vmatpush1.bf16.msra.mxu1 %v1225_v9  ;;  %v144_v14 = vld [vmem:[#allocation4] sm:$0x3]  ;;  %283 = vmatprep.subr.bf16.mxu0 %v1199_v3  ;;  %v143_v16 = vld [vmem:[#allocation3] sm:$0x3]  ;;  %v51_v20 = vsub.s32 0, %v50_v19  ;;  %v55_v22 = vsub.s32 1, %v50_v19 }
   0x9   :  { %196 = vmatprep.subr.bf16.mxu1 %v1234_v11  ;;  %249 = vrot.lane.b32.xlu0 %v144_v14, %s1159_s0  ;;  %v147_v17 = vpack.c.bf16 %v143_v16, %v143_v16 }
   0xa   :  { %985 = vmatmul.mubr.msk.bf16.vlgmr.msra.gmra.mrb[0].mxu0 %vm84_vm1, %v1054_v10  ;;  %v52_v23 = vrot.slane %v47_v21, %v51_v20  ;;  %v56_v24 = vrot.slane %v47_v21, %v55_v22 }
   0xb   :  { %284 = vmatpush1.bf16.msra.mxu0 %v1207_v5  ;;  %315 = vmatprep.mubr.bf16.mxu0 %v1157_v1 }
   0xc   :  { %197 = vmatpush1.bf16.msra.mxu1 %v1240_v12  ;;  %285 = vmatprep.subr.bf16.mxu0 %v1217_v7 }
   0xd   :  { %198 = vmatprep.subr.bf16.mxu1 %v1246_v13 }
   0xf   :  { %286 = vmatpush1.bf16.msra.mxu0 %v1225_v9 }
  0x10   :  { %199 = vmatpush1.bf16.msra.mxu1 %v1254_v15  ;;  %287 = vmatprep.subr.bf16.mxu0 %v1234_v11 }
  0x11   :  { %380 = vmatprep.subr.bf16.mxu1 %v1199_v3 }
  0x13   :  { %994 = vmatmul.mubr.msk.bf16.vlgmr.msra.gmra.mrb[0].mxu1 %vm188_vm2, %v147_v17  ;;  %288 = vmatpush1.bf16.msra.mxu0 %v1240_v12 }
  0x14   :  { %381 = vmatpush1.bf16.msra.mxu1 %v1207_v5  ;;  %289 = vmatprep.subr.bf16.mxu0 %v1246_v13 }
  0x15   :  { %382 = vmatprep.subr.bf16.mxu1 %v1217_v7  ;;  %412 = vmatprep.mubr.bf16.mxu1 %v1157_v1 }
  0x17   :  { %290 = vmatpush1.bf16.msra.mxu0 %v1254_v15 }
  0x18   :  { %383 = vmatpush1.bf16.msra.mxu1 %v1225_v9  ;;  %476 = vmatprep.subr.bf16.mxu0 %v1199_v3 }
  0x19   :  { %384 = vmatprep.subr.bf16.mxu1 %v1234_v11 }
  0x1c   :  { %385 = vmatpush1.bf16.msra.mxu1 %v1240_v12 }
  0x1d   :  { %386 = vmatprep.subr.bf16.mxu1 %v1246_v13 }
  0x20   :  { %387 = vmatpush1.bf16.msra.mxu1 %v1254_v15 }
  0x21   :  { %572 = vmatprep.subr.bf16.mxu1 %v1199_v3 }
  0x7b   :  { %v250_v49 = vpop.permute.xlu0 %249 }
  0xdd   :  { %v122_v25 = vpop.f32.mrb[0].mxu0 }
  0xde   :  { %v123_v26 = vadd.f32 %v122_v25, %v52_v23  ;;  %v124_v27 = vpop.f32.mrb[1].mxu0 }
  0xdf   :  { %v125_v28 = vadd.f32 %v124_v27, %v56_v24  ;;  %v126_v29 = vpop.f32.mrb[2].mxu0 }
  0xe0   :  { %131 = vst [vmem:[#allocation2] sm:$0xff] %v123_v26  ;;  %v127_v30 = vadd.f32 %v126_v29, %v52_v23  ;;  %v128_v31 = vpop.f32.mrb[3].mxu0 }
  0xe1   :  { %132 = vst [vmem:[#allocation2 + $0x8] sm:$0xff] %v125_v28  ;;  %v129_v32 = vadd.f32 %v128_v31, %v56_v24 }
  0xe2   :  { %133 = vst [vmem:[#allocation2 + $0x10] sm:$0xff] %v127_v30 }
  0xe3   :  { %134 = vst [vmem:[#allocation2 + $0x18] sm:$0xff] %v129_v32 }
  0xe6   :  { %v226_v33 = vpop.f32.mrb[0].mxu1 }
  0xe7   :  { %v228_v34 = vpop.f32.mrb[1].mxu1  ;;  %v145_v35 = vld [vmem:[#allocation2] sm:$0x3]  ;;  %v276_v62 = vld [vmem:[#allocation2] sm:$0xc] }
  0xe8   :  { %v230_v36 = vpop.f32.mrb[2].mxu1  ;;  %v233_v37 = vadd.f32 %v226_v33, %v145_v35  ;;  %v146_v40 = vld [vmem:[#allocation2 + $0x8] sm:$0x3]  ;;  %v277_v8 = vld [vmem:[#allocation2 + $0x8] sm:$0xc] }
  0xe9   :  { %v231_v38 = vpop.f32.mrb[3].mxu1  ;;  %v234_v41 = vadd.f32 %v228_v34, %v146_v40  ;;  %v372_v36 = vld [vmem:[#allocation2] sm:$0x30] }
  0xea   :  { %v995_v39 = vmul.f32 -1.442695, %v233_v37 }
  0xeb   :  { %v996_v47 = vmul.f32 -1.442695, %v234_v41 }
  0xec   :  { %1061 = vpow2.f32 %v995_v39 }
  0xed   :  { %1063 = vtanh.f32 %v234_v41 }
  0xf6   :  { %v1062_v42 = vpop.eup %1061 }
  0xf7   :  { %v238_v43 = vadd.f32 1.0, %v1062_v42  ;;  %v1064_v44 = vpop.eup %1063  ;;  %v373_v42 = vld [vmem:[#allocation2 + $0x8] sm:$0x30] }
  0xf9   :  { %1065 = vrcp.f32 %v238_v43 }
  0xfa   :  { %1067 = vpow2.f32 %v996_v47 }
 0x103   :  { %v1066_v45 = vpop.eup %1065 }
 0x104   :  { %v253_v46 = vmul.f32 %v1066_v45, %v1064_v44  ;;  %v1068_v48 = vpop.eup %1067  ;;  %v252_v51 = vmul.f32 %v1066_v45, %v250_v49 }
 0x105   :  { %v245_v50 = vadd.f32 1.0, %v1068_v48 }
 0x106   :  { %255 = vrot.lane.b32.xlu0 %v253_v46, %s1159_s0 }
 0x107   :  { %1069 = vrcp.f32 %v245_v50 }
 0x111   :  { %v1070_v54 = vpop.eup %1069 }
 0x178   :  { %v256_v52 = vpop.permute.xlu0 %255 }
 0x179   :  { %v258_v53 = vadd.f32 %v256_v52, %v252_v51 }
 0x17b   :  { %1071 = vtanh.f32 %v258_v53  ;;  %v346_v18 = vrot.slane %v258_v53, 6 }
 0x185   :  { %v1072_v55 = vpop.eup %1071 }
 0x186   :  { %v260_v56 = vmul.f32 %v1072_v55, %v1070_v54 }
 0x188   :  { %v1282_v57 = vpack.c.bf16 %v260_v56, %v260_v56 }
 0x18a   :  { %278 = vrot.lane.b32.xlu1 %v1282_v57, %s1159_s0 }
 0x1fc   :  { %v279_v58 = vpop.permute.xlu1 %278 }
 0x1fd   :  { %998 = vmatmul.mubr.msk.bf16.vlgmr.msra.gmra.mrb[4].mxu0 %vm188_vm2, %v279_v58 }
 0x1fe   :  { %477 = vmatpush1.bf16.msra.mxu0 %v1207_v5  ;;  %508 = vmatprep.mubr.bf16.mxu0 %v1157_v1 }
 0x1ff   :  { %478 = vmatprep.subr.bf16.mxu0 %v1217_v7 }
 0x202   :  { %479 = vmatpush1.bf16.msra.mxu0 %v1225_v9 }
 0x203   :  { %480 = vmatprep.subr.bf16.mxu0 %v1234_v11 }
 0x206   :  { %481 = vmatpush1.bf16.msra.mxu0 %v1240_v12 }
 0x207   :  { %482 = vmatprep.subr.bf16.mxu0 %v1246_v13 }
 0x20a   :  { %483 = vmatpush1.bf16.msra.mxu0 %v1254_v15 }
 0x20b   :  { %660 = vmatprep.subr.bf16.mxu0 %v1199_v3 }
 0x2d0   :  { %v317_v59 = vpop.f32.mrb[4].mxu0 }
 0x2d1   :  { %v326_v60 = vrot.slane %v317_v59, 6  ;;  %v319_v61 = vpop.f32.mrb[5].mxu0 }
 0x2d2   :  { %v321_v63 = vpop.f32.mrb[6].mxu0  ;;  %v327_v6 = vrot.slane %v319_v61, 6 }
 0x2d3   :  { %v330_v0 = vadd.f32 %v326_v60, %v276_v62  ;;  %v322_v2 = vpop.f32.mrb[7].mxu0 }
 0x2d4   :  { %v331_v10 = vadd.f32 %v327_v6, %v277_v8 }
 0x2d5   :  { %v999_v4 = vmul.f32 -1.442695, %v330_v0 }
 0x2d6   :  { %v1000_v22 = vmul.f32 -1.442695, %v331_v10 }
 0x2d7   :  { %1073 = vpow2.f32 %v999_v4  ;;  %v468_v4 = vld [vmem:[#allocation2] sm:$0xc0] }
 0x2d8   :  { %1075 = vtanh.f32 %v331_v10 }
 0x2e1   :  { %v1074_v14 = vpop.eup %1073 }
 0x2e2   :  { %v335_v16 = vadd.f32 1.0, %v1074_v14  ;;  %v1076_v17 = vpop.eup %1075 }
 0x2e4   :  { %1077 = vrcp.f32 %v335_v16 }
 0x2e5   :  { %1079 = vpow2.f32 %v1000_v22 }
 0x2ee   :  { %v1078_v19 = vpop.eup %1077 }
 0x2ef   :  { %v349_v20 = vmul.f32 %v1078_v19, %v1076_v17  ;;  %v348_v21 = vmul.f32 %v1078_v19, %v346_v18  ;;  %v1080_v23 = vpop.eup %1079  ;;  %v469_v17 = vld [vmem:[#allocation2 + $0x8] sm:$0xc0] }
 0x2f0   :  { %v342_v24 = vadd.f32 1.0, %v1080_v23 }
 0x2f1   :  { %351 = vrot.lane.b32.xlu1 %v349_v20, %s1159_s0 }
 0x2f2   :  { %1081 = vrcp.f32 %v342_v24 }
 0x2fc   :  { %v1082_v27 = vpop.eup %1081 }
 0x363   :  { %v352_v25 = vpop.permute.xlu1 %351 }
 0x364   :  { %v354_v26 = vadd.f32 %v352_v25, %v348_v21 }
 0x366   :  { %1083 = vtanh.f32 %v354_v26  ;;  %v443_v47 = vrot.slane %v354_v26, 6 }
 0x370   :  { %v1084_v28 = vpop.eup %1083 }
 0x371   :  { %v356_v29 = vmul.f32 %v1084_v28, %v1082_v27 }
 0x373   :  { %v1297_v30 = vpack.c.bf16 %v356_v29, %v356_v29 }
 0x375   :  { %v374_v31 = vrot.slane %v1297_v30, 1 }
 0x377   :  { %375 = vrot.lane.b32.xlu0 %v374_v31, %s1159_s0 }
 0x3e9   :  { %v376_v32 = vpop.permute.xlu0 %375 }
 0x3ea   :  { %1002 = vmatmul.mubr.msk.bf16.vlgmr.msra.gmra.mrb[4].mxu1 %vm188_vm2, %v376_v32 }
 0x3eb   :  { %573 = vmatpush1.bf16.msra.mxu1 %v1207_v5  ;;  %604 = vmatprep.mubr.bf16.mxu1 %v1157_v1 }
 0x3ec   :  { %574 = vmatprep.subr.bf16.mxu1 %v1217_v7 }
 0x3ef   :  { %575 = vmatpush1.bf16.msra.mxu1 %v1225_v9 }
 0x3f0   :  { %576 = vmatprep.subr.bf16.mxu1 %v1234_v11 }
 0x3f3   :  { %577 = vmatpush1.bf16.msra.mxu1 %v1240_v12 }
 0x3f4   :  { %578 = vmatprep.subr.bf16.mxu1 %v1246_v13 }
 0x3f7   :  { %579 = vmatpush1.bf16.msra.mxu1 %v1254_v15 }
 0x3f8   :  { %755 = vmatprep.subr.bf16.mxu1 %v1199_v3 }
 0x4bd   :  { %v414_v33 = vpop.f32.mrb[4].mxu1 }
 0x4be   :  { %v423_v34 = vrot.slane %v414_v33, 4  ;;  %v416_v35 = vpop.f32.mrb[5].mxu1 }
 0x4bf   :  { %v418_v37 = vpop.f32.mrb[6].mxu1  ;;  %v424_v41 = vrot.slane %v416_v35, 4 }
 0x4c0   :  { %v427_v38 = vadd.f32 %v423_v34, %v372_v36  ;;  %v419_v39 = vpop.f32.mrb[7].mxu1  ;;  %v564_v37 = vld [vmem:[#allocation2 + $0x10] sm:$0x3] }
 0x4c1   :  { %v428_v43 = vadd.f32 %v424_v41, %v373_v42 }
 0x4c2   :  { %v1003_v40 = vmul.f32 -1.442695, %v427_v38 }
 0x4c3   :  { %v1004_v51 = vmul.f32 -1.442695, %v428_v43 }
 0x4c4   :  { %1085 = vpow2.f32 %v1003_v40 }
 0x4c5   :  { %1087 = vtanh.f32 %v428_v43 }
 0x4ce   :  { %v1086_v44 = vpop.eup %1085 }
 0x4cf   :  { %v432_v45 = vadd.f32 1.0, %v1086_v44  ;;  %v1088_v46 = vpop.eup %1087  ;;  %v565_v44 = vld [vmem:[#allocation2 + $0x18] sm:$0x3] }
 0x4d1   :  { %1089 = vrcp.f32 %v432_v45 }
 0x4d2   :  { %1091 = vpow2.f32 %v1004_v51 }
 0x4db   :  { %v1090_v48 = vpop.eup %1089 }
 0x4dc   :  { %v446_v49 = vmul.f32 %v1090_v48, %v1088_v46  ;;  %v445_v50 = vmul.f32 %v1090_v48, %v443_v47  ;;  %v1092_v52 = vpop.eup %1091 }
 0x4dd   :  { %v439_v53 = vadd.f32 1.0, %v1092_v52 }
 0x4de   :  { %448 = vrot.lane.b32.xlu1 %v446_v49, %s1159_s0 }
 0x4df   :  { %1093 = vrcp.f32 %v439_v53 }
 0x4e9   :  { %v1094_v56 = vpop.eup %1093 }
 0x550   :  { %v449_v54 = vpop.permute.xlu1 %448 }
 0x551   :  { %v451_v55 = vadd.f32 %v449_v54, %v445_v50 }
 0x553   :  { %1095 = vtanh.f32 %v451_v55  ;;  %v539_v22 = vrot.slane %v451_v55, 6 }
 0x55d   :  { %v1096_v58 = vpop.eup %1095 }
 0x55e   :  { %v453_v59 = vmul.f32 %v1096_v58, %v1094_v56 }
 0x560   :  { %v1312_v60 = vpack.c.bf16 %v453_v59, %v453_v59 }
 0x562   :  { %v470_v61 = vrot.slane %v1312_v60, 2 }
 0x564   :  { %471 = vrot.lane.b32.xlu0 %v470_v61, %s1159_s0 }
 0x5d6   :  { %v472_v62 = vpop.permute.xlu0 %471 }
 0x5d7   :  { %1007 = vmatmul.mubr.msk.bf16.vlgmr.msra.gmra.mrb[8].mxu0 %vm188_vm2, %v472_v62 }
 0x5d8   :  { %661 = vmatpush1.bf16.msra.mxu0 %v1207_v5  ;;  %692 = vmatprep.mubr.bf16.mxu0 %v1157_v1 }
 0x5d9   :  { %662 = vmatprep.subr.bf16.mxu0 %v1217_v7 }
 0x5dc   :  { %663 = vmatpush1.bf16.msra.mxu0 %v1225_v9 }
 0x5dd   :  { %664 = vmatprep.subr.bf16.mxu0 %v1234_v11 }
 0x5e0   :  { %665 = vmatpush1.bf16.msra.mxu0 %v1240_v12 }
 0x5e1   :  { %666 = vmatprep.subr.bf16.mxu0 %v1246_v13 }
 0x5e4   :  { %667 = vmatpush1.bf16.msra.mxu0 %v1254_v15 }
 0x5e5   :  { %851 = vmatprep.subr.bf16.mxu0 %v1199_v3 }
 0x6aa   :  { %v510_v63 = vpop.f32.mrb[8].mxu0 }
 0x6ab   :  { %v519_v0 = vrot.slane %v510_v63, 2  ;;  %v512_v2 = vpop.f32.mrb[9].mxu0 }
 0x6ac   :  { %v514_v6 = vpop.f32.mrb[10].mxu0  ;;  %v520_v16 = vrot.slane %v512_v2, 2 }
 0x6ad   :  { %v523_v8 = vadd.f32 %v519_v0, %v468_v4  ;;  %v515_v10 = vpop.f32.mrb[11].mxu0 }
 0x6ae   :  { %v524_v18 = vadd.f32 %v520_v16, %v469_v17  ;;  %v654_v16 = vld [vmem:[#allocation2 + $0x18] sm:$0xc] }
 0x6af   :  { %v1008_v14 = vmul.f32 -1.442695, %v523_v8  ;;  %v653_v8 = vld [vmem:[#allocation2 + $0x10] sm:$0xc] }
 0x6b0   :  { %v1009_v25 = vmul.f32 -1.442695, %v524_v18 }
 0x6b1   :  { %1097 = vpow2.f32 %v1008_v14 }
 0x6b2   :  { %1099 = vtanh.f32 %v524_v18 }
 0x6bb   :  { %v1098_v19 = vpop.eup %1097 }
 0x6bc   :  { %v528_v20 = vadd.f32 1.0, %v1098_v19  ;;  %v1100_v21 = vpop.eup %1099 }
 0x6be   :  { %1101 = vrcp.f32 %v528_v20 }
 0x6bf   :  { %1103 = vpow2.f32 %v1009_v25 }
 0x6c8   :  { %v1102_v23 = vpop.eup %1101 }
 0x6c9   :  { %v542_v3 = vmul.f32 %v1102_v23, %v1100_v21  ;;  %v541_v24 = vmul.f32 %v1102_v23, %v539_v22  ;;  %v1104_v26 = vpop.eup %1103 }
 0x6ca   :  { %v535_v27 = vadd.f32 1.0, %v1104_v26 }
 0x6cb   :  { %544 = vrot.lane.b32.xlu1 %v542_v3, %s1159_s0 }
 0x6cc   :  { %1105 = vrcp.f32 %v535_v27 }
 0x6d6   :  { %v1106_v31 = vpop.eup %1105 }
 0x73d   :  { %v545_v28 = vpop.permute.xlu1 %544 }
 0x73e   :  { %v547_v29 = vadd.f32 %v545_v28, %v541_v24 }
 0x740   :  { %1107 = vtanh.f32 %v547_v29  ;;  %v629_v49 = vrot.slane %v547_v29, 6 }
 0x74a   :  { %v1108_v32 = vpop.eup %1107 }
 0x74b   :  { %v549_v33 = vmul.f32 %v1108_v32, %v1106_v31 }
 0x74d   :  { %v1327_v34 = vpack.c.bf16 %v549_v33, %v549_v33 }
 0x74f   :  { %v566_v35 = vrot.slane %v1327_v34, 3 }
 0x751   :  { %567 = vrot.lane.b32.xlu0 %v566_v35, %s1159_s0  ;;  %v747_v35 = vld [vmem:[#allocation2 + $0x10] sm:$0x30] }
 0x7c3   :  { %v568_v36 = vpop.permute.xlu0 %567 }
 0x7c4   :  { %1012 = vmatmul.mubr.msk.bf16.vlgmr.msra.gmra.mrb[8].mxu1 %vm188_vm2, %v568_v36 }
 0x7c5   :  { %756 = vmatpush1.bf16.msra.mxu1 %v1207_v5  ;;  %787 = vmatprep.mubr.bf16.mxu1 %v1157_v1 }
 0x7c6   :  { %757 = vmatprep.subr.bf16.mxu1 %v1217_v7 }
 0x7c9   :  { %758 = vmatpush1.bf16.msra.mxu1 %v1225_v9 }
 0x7ca   :  { %759 = vmatprep.subr.bf16.mxu1 %v1234_v11 }
 0x7cd   :  { %760 = vmatpush1.bf16.msra.mxu1 %v1240_v12 }
 0x7ce   :  { %761 = vmatprep.subr.bf16.mxu1 %v1246_v13 }
 0x7d1   :  { %762 = vmatpush1.bf16.msra.mxu1 %v1254_v15 }
 0x897   :  { %v606_v38 = vpop.f32.mrb[8].mxu1 }
 0x898   :  { %v613_v39 = vadd.f32 %v606_v38, %v564_v37  ;;  %v608_v40 = vpop.f32.mrb[9].mxu1 }
 0x899   :  { %v610_v41 = vpop.f32.mrb[10].mxu1  ;;  %v614_v45 = vadd.f32 %v608_v40, %v565_v44 }
 0x89a   :  { %v1013_v42 = vmul.f32 -1.442695, %v613_v39  ;;  %v611_v43 = vpop.f32.mrb[11].mxu1  ;;  %v748_v41 = vld [vmem:[#allocation2 + $0x18] sm:$0x30] }
 0x89b   :  { %v1014_v53 = vmul.f32 -1.442695, %v614_v45 }
 0x89c   :  { %1109 = vpow2.f32 %v1013_v42 }
 0x89d   :  { %1111 = vtanh.f32 %v614_v45 }
 0x8a6   :  { %v1110_v46 = vpop.eup %1109 }
 0x8a7   :  { %v618_v47 = vadd.f32 1.0, %v1110_v46  ;;  %v1112_v48 = vpop.eup %1111 }
 0x8a9   :  { %1113 = vrcp.f32 %v618_v47 }
 0x8aa   :  { %1115 = vpow2.f32 %v1014_v53 }
 0x8b3   :  { %v1114_v50 = vpop.eup %1113 }
 0x8b4   :  { %v632_v51 = vmul.f32 %v1114_v50, %v1112_v48  ;;  %v631_v52 = vmul.f32 %v1114_v50, %v629_v49  ;;  %v1116_v54 = vpop.eup %1115 }
 0x8b5   :  { %v625_v55 = vadd.f32 1.0, %v1116_v54 }
 0x8b6   :  { %634 = vrot.lane.b32.xlu1 %v632_v51, %s1159_s0 }
 0x8b7   :  { %1117 = vrcp.f32 %v625_v55 }
 0x8c1   :  { %v1118_v59 = vpop.eup %1117 }
 0x928   :  { %v635_v56 = vpop.permute.xlu1 %634 }
 0x929   :  { %v637_v58 = vadd.f32 %v635_v56, %v631_v52 }
 0x92b   :  { %1119 = vtanh.f32 %v637_v58 }
 0x935   :  { %v1120_v61 = vpop.eup %1119 }
 0x936   :  { %v639_v62 = vmul.f32 %v1120_v61, %v1118_v59 }
 0x938   :  { %v1341_v63 = vpack.c.bf16 %v639_v62, %v639_v62 }
 0x93a   :  { %655 = vrot.lane.b32.xlu0 %v1341_v63, %s1159_s0 }
 0x9ac   :  { %v656_v0 = vpop.permute.xlu0 %655 }
 0x9ad   :  { %1016 = vmatmul.mubr.msk.bf16.vlgmr.msra.gmra.mrb[12].mxu0 %vm188_vm2, %v656_v0 }
 0x9ae   :  { %852 = vmatpush1.bf16.msra.mxu0 %v1207_v5  ;;  %883 = vmatprep.mubr.bf16.mxu0 %v1157_v1 }
 0x9af   :  { %853 = vmatprep.subr.bf16.mxu0 %v1217_v7 }
 0x9b2   :  { %854 = vmatpush1.bf16.msra.mxu0 %v1225_v9 }
 0x9b3   :  { %855 = vmatprep.subr.bf16.mxu0 %v1234_v11 }
 0x9b6   :  { %856 = vmatpush1.bf16.msra.mxu0 %v1240_v12 }
 0x9b7   :  { %857 = vmatprep.subr.bf16.mxu0 %v1246_v13  ;;  %v723_v13 = vrot.slane %v637_v58, 6 }
 0x9ba   :  { %858 = vmatpush1.bf16.msra.mxu0 %v1254_v15 }
 0xa80   :  { %v694_v2 = vpop.f32.mrb[12].mxu0 }
 0xa81   :  { %v703_v4 = vrot.slane %v694_v2, 6  ;;  %v696_v6 = vpop.f32.mrb[13].mxu0 }
 0xa82   :  { %v698_v10 = vpop.f32.mrb[14].mxu0  ;;  %v704_v7 = vrot.slane %v696_v6, 6 }
 0xa83   :  { %v707_v5 = vadd.f32 %v703_v4, %v653_v8  ;;  %v699_v14 = vpop.f32.mrb[15].mxu0 }
 0xa84   :  { %v708_v9 = vadd.f32 %v704_v7, %v654_v16  ;;  %v843_v16 = vld [vmem:[#allocation2 + $0x10] sm:$0xc0] }
 0xa85   :  { %v1017_v1 = vmul.f32 -1.442695, %v707_v5 }
 0xa86   :  { %v1018_v20 = vmul.f32 -1.442695, %v708_v9 }
 0xa87   :  { %1121 = vpow2.f32 %v1017_v1 }
 0xa88   :  { %1123 = vtanh.f32 %v708_v9 }
 0xa91   :  { %v1122_v17 = vpop.eup %1121 }
 0xa92   :  { %v712_v11 = vadd.f32 1.0, %v1122_v17  ;;  %v1124_v12 = vpop.eup %1123 }
 0xa94   :  { %1125 = vrcp.f32 %v712_v11 }
 0xa95   :  { %1127 = vpow2.f32 %v1018_v20 }
 0xa9e   :  { %v1126_v18 = vpop.eup %1125 }
 0xa9f   :  { %v726_v15 = vmul.f32 %v1126_v18, %v1124_v12  ;;  %v725_v19 = vmul.f32 %v1126_v18, %v723_v13  ;;  %v1128_v21 = vpop.eup %1127  ;;  %v844_v18 = vld [vmem:[#allocation2 + $0x18] sm:$0xc0] }
 0xaa0   :  { %v719_v22 = vadd.f32 1.0, %v1128_v21 }
 0xaa1   :  { %728 = vrot.lane.b32.xlu1 %v726_v15, %s1159_s0 }
 0xaa2   :  { %1129 = vrcp.f32 %v719_v22 }
 0xaac   :  { %v1130_v24 = vpop.eup %1129 }
 0xb13   :  { %v729_v23 = vpop.permute.xlu1 %728 }
 0xb14   :  { %v731_v3 = vadd.f32 %v729_v23, %v725_v19 }
 0xb16   :  { %1131 = vtanh.f32 %v731_v3  ;;  %v818_v46 = vrot.slane %v731_v3, 6 }
 0xb20   :  { %v1132_v25 = vpop.eup %1131 }
 0xb21   :  { %v733_v26 = vmul.f32 %v1132_v25, %v1130_v24  ;;  %v270_v25 = vrot.slane %v1282_v57, 5 }
 0xb23   :  { %v1355_v27 = vpack.c.bf16 %v733_v26, %v733_v26  ;;  %v366_v26 = vrot.slane %v1297_v30, 7 }
 0xb25   :  { %v749_v28 = vrot.slane %v1355_v27, 1 }
 0xb27   :  { %750 = vrot.lane.b32.xlu0 %v749_v28, %s1159_s0  ;;  %v1006_v28 = vrot.slane %v1312_v60, 9 }
 0xb99   :  { %v751_v29 = vpop.permute.xlu0 %750 }
 0xb9a   :  { %1020 = vmatmul.mubr.msk.bf16.vlgmr.msra.gmra.mrb[12].mxu1 %vm188_vm2, %v751_v29  ;;  %v1011_v29 = vrot.slane %v1327_v34, 11 }
 0xc6d   :  { %v789_v31 = vpop.f32.mrb[12].mxu1 }
 0xc6e   :  { %v798_v32 = vrot.slane %v789_v31, 4  ;;  %v791_v33 = vpop.f32.mrb[13].mxu1  ;;  %v648_v31 = vrot.slane %v1341_v63, 5 }
 0xc6f   :  { %v793_v36 = vpop.f32.mrb[14].mxu1  ;;  %v799_v40 = vrot.slane %v791_v33, 4 }
 0xc70   :  { %v802_v37 = vadd.f32 %v798_v32, %v747_v35  ;;  %v794_v38 = vpop.f32.mrb[15].mxu1 }
 0xc71   :  { %v803_v42 = vadd.f32 %v799_v40, %v748_v41 }
 0xc72   :  { %v1021_v39 = vmul.f32 -1.442695, %v802_v37 }
 0xc73   :  { %v1022_v50 = vmul.f32 -1.442695, %v803_v42 }
 0xc74   :  { %1133 = vpow2.f32 %v1021_v39 }
 0xc75   :  { %1135 = vtanh.f32 %v803_v42 }
 0xc7e   :  { %v1134_v43 = vpop.eup %1133 }
 0xc7f   :  { %v807_v44 = vadd.f32 1.0, %v1134_v43  ;;  %v1136_v45 = vpop.eup %1135 }
 0xc81   :  { %1137 = vrcp.f32 %v807_v44 }
 0xc82   :  { %1139 = vpow2.f32 %v1022_v50 }
 0xc8b   :  { %v1138_v47 = vpop.eup %1137 }
 0xc8c   :  { %v821_v48 = vmul.f32 %v1138_v47, %v1136_v45  ;;  %v820_v49 = vmul.f32 %v1138_v47, %v818_v46  ;;  %v1140_v51 = vpop.eup %1139 }
 0xc8d   :  { %v814_v52 = vadd.f32 1.0, %v1140_v51 }
 0xc8e   :  { %823 = vrot.lane.b32.xlu1 %v821_v48, %s1159_s0 }
 0xc8f   :  { %1141 = vrcp.f32 %v814_v52 }
 0xc99   :  { %v1142_v55 = vpop.eup %1141 }
 0xd00   :  { %v824_v53 = vpop.permute.xlu1 %823 }
 0xd01   :  { %v826_v54 = vadd.f32 %v824_v53, %v820_v49 }
 0xd03   :  { %1143 = vtanh.f32 %v826_v54  ;;  %v914_v22 = vrot.slane %v826_v54, 6 }
 0xd0d   :  { %v1144_v56 = vpop.eup %1143 }
 0xd0e   :  { %v828_v58 = vmul.f32 %v1144_v56, %v1142_v55 }
 0xd10   :  { %v1361_v59 = vpack.c.bf16 %v828_v58, %v828_v58 }
 0xd12   :  { %v845_v61 = vrot.slane %v1361_v59, 2 }
 0xd14   :  { %846 = vrot.lane.b32.xlu0 %v845_v61, %s1159_s0 }
 0xd18   :  { %265 = vrot.lane.b32.xlu0 %v1282_v57, %s1159_s0  ;;  %v742_v57 = vrot.slane %v1355_v27, 7 }
 0xd1c   :  { %361 = vrot.lane.b32.xlu0 %v1297_v30, %s1159_s0  ;;  %v1024_v30 = vrot.slane %v1361_v59, 9 }
 0xd20   :  { %458 = vrot.lane.b32.xlu0 %v1312_v60, %s1159_s0 }
 0xd24   :  { %554 = vrot.lane.b32.xlu0 %v1327_v34, %s1159_s0 }
 0xd28   :  { %644 = vrot.lane.b32.xlu0 %v1341_v63, %s1159_s0 }
 0xd2c   :  { %738 = vrot.lane.b32.xlu0 %v1355_v27, %s1159_s0 }
 0xd30   :  { %833 = vrot.lane.b32.xlu0 %v1361_v59, %s1159_s0 }
 0xd86   :  { %v847_v62 = vpop.permute.xlu0 %846 }
 0xd87   :  { %1025 = vmatmul.mubr.msk.bf16.vlgmr.msra.gmra.mrb[16].mxu0 %vm188_vm2, %v847_v62 }
 0xd8a   :  { %v266_v0 = vpop.permute.xlu0 %265 }
 0xd8b   :  { %269 = vst.msk [vmem:[%s1467_s4] sm:$0x1] %vm268_vm3, %v266_v0 }
 0xd8e   :  { %v362_v2 = vpop.permute.xlu0 %361 }
 0xd8f   :  { %365 = vst.msk [vmem:[%s1467_s4] sm:$0x2] %vm364_vm4, %v362_v2 }
 0xd92   :  { %v459_v4 = vpop.permute.xlu0 %458 }
 0xd93   :  { %461 = vst.msk [vmem:[%s1467_s4] sm:$0x4] %vm370_vm5, %v459_v4 }
 0xd96   :  { %v555_v6 = vpop.permute.xlu0 %554 }
 0xd97   :  { %557 = vst.msk [vmem:[%s1467_s4] sm:$0x8] %vm274_vm6, %v555_v6 }
 0xd9a   :  { %v645_v8 = vpop.permute.xlu0 %644 }
 0xd9b   :  { %647 = vst.msk [vmem:[%s1467_s4 + $0x4] sm:$0x1] %vm268_vm3, %v645_v8 }
 0xd9e   :  { %v739_v10 = vpop.permute.xlu0 %738 }
 0xd9f   :  { %741 = vst.msk [vmem:[%s1467_s4 + $0x4] sm:$0x2] %vm364_vm4, %v739_v10 }
 0xda2   :  { %v834_v5 = vpop.permute.xlu0 %833 }
 0xda3   :  { %836 = vst.msk [vmem:[%s1467_s4 + $0x4] sm:$0x4] %vm370_vm5, %v834_v5 }
 0xe5a   :  { %v885_v14 = vpop.f32.mrb[16].mxu0 }
 0xe5b   :  { %v894_v1 = vrot.slane %v885_v14, 2  ;;  %v887_v7 = vpop.f32.mrb[17].mxu0 }
 0xe5c   :  { %v889_v9 = vpop.f32.mrb[18].mxu0  ;;  %v895_v13 = vrot.slane %v887_v7, 2 }
 0xe5d   :  { %v898_v17 = vadd.f32 %v894_v1, %v843_v16  ;;  %v890_v11 = vpop.f32.mrb[19].mxu0 }
 0xe5e   :  { %v899_v15 = vadd.f32 %v895_v13, %v844_v18 }
 0xe5f   :  { %v1026_v12 = vmul.f32 -1.442695, %v898_v17 }
 0xe60   :  { %v1027_v32 = vmul.f32 -1.442695, %v899_v15 }
 0xe61   :  { %1145 = vpow2.f32 %v1026_v12 }
 0xe62   :  { %1147 = vtanh.f32 %v899_v15 }
 0xe6b   :  { %v1146_v19 = vpop.eup %1145 }
 0xe6c   :  { %v903_v20 = vadd.f32 1.0, %v1146_v19  ;;  %v1148_v21 = vpop.eup %1147 }
 0xe6e   :  { %1149 = vrcp.f32 %v903_v20 }
 0xe6f   :  { %1151 = vpow2.f32 %v1027_v32 }
 0xe78   :  { %v1150_v23 = vpop.eup %1149 }
 0xe79   :  { %v917_v3 = vmul.f32 %v1150_v23, %v1148_v21  ;;  %v916_v24 = vmul.f32 %v1150_v23, %v914_v22  ;;  %v1152_v60 = vpop.eup %1151 }
 0xe7a   :  { %v910_v33 = vadd.f32 1.0, %v1152_v60 }
 0xe7b   :  { %919 = vrot.lane.b32.xlu1 %v917_v3, %s1159_s0 }
 0xe7c   :  { %1153 = vrcp.f32 %v910_v33 }
 0xe7f   :  { %271 = vrot.lane.b32.xlu1 %v270_v25, %s1160_s7 }
 0xe83   :  { %367 = vrot.lane.b32.xlu1 %v366_v26, %s1160_s7 }
 0xe86   :  { %v1154_v27 = vpop.eup %1153 }
 0xe87   :  { %464 = vrot.lane.b32.xlu1 %v1006_v28, %s1160_s7 }
 0xe8b   :  { %560 = vrot.lane.b32.xlu1 %v1011_v29, %s1160_s7 }
 0xe8f   :  { %649 = vrot.lane.b32.xlu1 %v648_v31, %s1160_s7 }
 0xe93   :  { %743 = vrot.lane.b32.xlu1 %v742_v57, %s1160_s7 }
 0xe97   :  { %839 = vrot.lane.b32.xlu1 %v1024_v30, %s1160_s7 }
 0xeed   :  { %v920_v35 = vpop.permute.xlu1 %919 }
 0xeee   :  { %v922_v34 = vadd.f32 %v920_v35, %v916_v24 }
 0xef0   :  { %1155 = vtanh.f32 %v922_v34 }
 0xef1   :  { %v272_v36 = vpop.permute.xlu1 %271 }
 0xef2   :  { %275 = vst.msk [vmem:[%s1468_s5 + $0x4] sm:$0x8] %vm274_vm6, %v272_v36 }
 0xef5   :  { %v368_v63 = vpop.permute.xlu1 %367 }
 0xef6   :  { %371 = vst.msk [vmem:[%s1468_s5 + $0x4] sm:$0x4] %vm370_vm5, %v368_v63 }
 0xef9   :  { %v465_v37 = vpop.permute.xlu1 %464 }
 0xefa   :  { %v1156_v38 = vpop.eup %1155  ;;  %467 = vst.msk [vmem:[%s1468_s5 + $0x4] sm:$0x2] %vm364_vm4, %v465_v37 }
 0xefb   :  { %v924_v39 = vmul.f32 %v1156_v38, %v1154_v27 }
 0xefd   :  { %v561_v40 = vpop.permute.xlu1 %560  ;;  %v1037_v41 = vpack.c.bf16 %v924_v39, %v924_v39 }
 0xefe   :  { %563 = vst.msk [vmem:[%s1468_s5 + $0x4] sm:$0x1] %vm268_vm3, %v561_v40 }
 0xeff   :  { %929 = vrot.lane.b32.xlu0 %v1037_v41, %s1159_s0  ;;  %v1029_v42 = vrot.slane %v1037_v41, 11 }
 0xf01   :  { %935 = vrot.lane.b32.xlu1 %v1029_v42, %s1160_s7  ;;  %v650_v43 = vpop.permute.xlu1 %649 }
 0xf02   :  { %652 = vst.msk [vmem:[%s1468_s5] sm:$0x8] %vm274_vm6, %v650_v43 }
 0xf03   :  { %940 = vrot.lane.b32.xlu0 %v924_v39, %s1159_s0 }
 0xf05   :  { %946 = vrot.lane.b32.xlu1 %v922_v34, %s1159_s0  ;;  %v744_v44 = vpop.permute.xlu1 %743 }
 0xf06   :  { %746 = vst.msk [vmem:[%s1468_s5] sm:$0x4] %vm370_vm5, %v744_v44 }
 0xf09   :  { %v840_v45 = vpop.permute.xlu1 %839 }
 0xf0a   :  { %842 = vst.msk [vmem:[%s1468_s5] sm:$0x2] %vm364_vm4, %v840_v45 }
 0xf71   :  { %v930_v46 = vpop.permute.xlu0 %929 }
 0xf72   :  { %932 = vst.msk [vmem:[%s1467_s4 + $0x4] sm:$0x8] %vm274_vm6, %v930_v46 }
 0xf73   :  { %v936_v47 = vpop.permute.xlu1 %935 }
 0xf74   :  { %938 = vst.msk [vmem:[%s1468_s5] sm:$0x1] %vm268_vm3, %v936_v47 }
 0xf75   :  { %v941_v48 = vpop.permute.xlu0 %940 }
 0xf76   :  { %944 = vst.msk [vmem:[#allocation3 - $0x6] sm:$0xc0] %vm943_vm7, %v941_v48 }
 0xf77   :  { %v947_v49 = vpop.permute.xlu1 %946 }
 0xf78   :  { %949 = vst.msk [vmem:[#allocation4 - $0x6] sm:$0xc0] %vm943_vm7, %v947_v49 }

</bundles_post_ra>
